<compile_context>
chip_gen: v5e
topology: v5e:2x2
jax: 0.10.0
libtpu: 0.0.40
codegen_flags: <defaults>
</compile_context>

<pallas_src>
import functools
import math

import jax
import jax.numpy as jnp
from jax.experimental import pallas as pl
from jax.experimental.pallas import tpu as pltpu

LN_EPS = 1e-5
GELU_C = 0.7978845608028654           # sqrt(2/pi), GPT-2 "gelu_new"


# --------------------------------------------------------------------------
# helpers
# --------------------------------------------------------------------------
def _vmem_limit_bytes():
    """Per-generation VMEM budget (~96 MiB on 128 MiB parts, ~48 MiB on v7x)."""
    try:
        cap = pltpu.get_tpu_info().vmem_capacity_bytes
    except Exception:                      # off-device tracing / older runtimes
        cap = 128 * 1024 * 1024
    return int(min(cap * 3 // 4, 100 * 1024 * 1024))


def _pick_q_tile(seq_len):
    """Largest convenient query tile that divides S (caps live score memory)."""
    if seq_len <= 256:
        return seq_len
    for t in (256, 128, 64, 32, 16, 8):
        if seq_len % t == 0:
            return t
    return seq_len


def _layernorm(v, g, b):
    mu = v.mean(-1, keepdims=True)
    var = ((v - mu) ** 2).mean(-1, keepdims=True)
    return (v - mu) * jax.lax.rsqrt(var + LN_EPS) * g + b


# --------------------------------------------------------------------------
# Pallas kernels
# --------------------------------------------------------------------------
def gpt2_stack_kernel(x_in_ref,
                      ln1_g_ref, ln1_b_ref, wqkv_ref, bqkv_ref,
                      wo_ref, bo_ref, ln2_g_ref, ln2_b_ref,
                      wfc_ref, bfc_ref, wproj_ref, bproj_ref,
                      lnf_g_ref, lnf_b_ref,
                      hid_ref, hbf16_ref,
                      x_acc, mask_sc, attn_sc, q_sc,
                      *, num_heads, q_tile):
    """One GPT-2 block per grid step; grid = (num_layers,).

    The fp32 residual stream for the WHOLE batch is carried across the layer
    axis in `x_acc`; per-layer bf16 weights are streamed by the BlockSpec
    pipeline (layer l+1 weight DMA overlaps layer l compute).  ln_f is fused
    into the last-layer epilogue.
    """
    l = pl.program_id(0)
    B, S, H = hid_ref.shape
    BS = B * S
    hd = H // num_heads
    n_qt = S // q_tile

    @pl.when(l == 0)
    def _():
        x_acc[...] = x_in_ref[...].reshape(BS, H).astype(jnp.float32)
        # causal additive bias, built once and reused by every layer
        qpos = jax.lax.broadcasted_iota(jnp.int32, (S, S), 0)
        kpos = jax.lax.broadcasted_iota(jnp.int32, (S, S), 1)
        mask_sc[...] = jnp.where(qpos >= kpos, 0.0, -1e9).astype(jnp.float32)

    x = x_acc[...]                                    # [BS, H] fp32 residual

    # ---------------- attention sub-block (pre-LN) ----------------
    h1 = _layernorm(x, ln1_g_ref[...], ln1_b_ref[...])
    qkv = jnp.dot(h1.astype(jnp.bfloat16), wqkv_ref[...],
                  preferred_element_type=jnp.float32) + bqkv_ref[...]   # [BS,3H]
    # NOTE: 1/sqrt(hd) is pre-folded into the q columns of wqkv / bqkv.
    q_sc[...] = qkv[:, :H].reshape(B, S, H).astype(jnp.bfloat16)
    k = qkv[:, H:2 * H].reshape(B, S, H).astype(jnp.bfloat16)
    v = qkv[:, 2 * H:].reshape(B, S, H).astype(jnp.bfloat16)

    pow2 = (q_tile & (q_tile - 1)) == 0
    for h in range(num_heads):                        # static, no stack/concat
        lo = h * hd
        kh = k[:, :, lo:lo + hd]                      # [B,S,hd] bf16
        vh = v[:, :, lo:lo + hd]

        @pl.loop(0, n_qt)                             # bounds live scores to [B,tq,S]
        def _(qi, kh=kh, vh=vh, lo=lo):
            i0 = qi * q_tile
            if pow2:
                i0 = pl.multiple_of(i0, q_tile)
            qt = q_sc[:, pl.ds(i0, q_tile), lo:lo + hd]              # [B,tq,hd]
            s = jnp.einsum('bqd,bkd->bqk', qt, kh,
                           preferred_element_type=jnp.float32)       # [B,tq,S]
            s = s + mask_sc[pl.ds(i0, q_tile), :][None]
            s = s - s.max(-1, keepdims=True)
            p = jnp.exp(s)
            p = p * pl.reciprocal(p.sum(-1, keepdims=True), approx=True)  # EUP
            o = jnp.einsum('bqk,bkd->bqd', p.astype(jnp.bfloat16), vh,
                           preferred_element_type=jnp.float32)       # [B,tq,hd]
            attn_sc[:, pl.ds(i0, q_tile), lo:lo + hd] = o.astype(jnp.bfloat16)

    attn = jnp.dot(attn_sc[...].reshape(BS, H), wo_ref[...],
                   preferred_element_type=jnp.float32) + bo_ref[...]
    x = x + attn

    # ---------------- MLP sub-block (pre-LN) ----------------
    h2 = _layernorm(x, ln2_g_ref[...], ln2_b_ref[...])
    f = jnp.dot(h2.astype(jnp.bfloat16), wfc_ref[...],
                preferred_element_type=jnp.float32) + bfc_ref[...]
    # TODO(synk): on v6e/v7x a bf16 GELU would halve the [BS,4H] VALU cost.
    f = 0.5 * f * (1.0 + jnp.tanh(GELU_C * (f + 0.044715 * f * f * f)))
    f = jnp.dot(f.astype(jnp.bfloat16), wproj_ref[...],
                preferred_element_type=jnp.float32) + bproj_ref[...]
    x_acc[...] = x + f

    # fused ln_f epilogue: fp32 hidden states + bf16 LM-head input
    @pl.when(l == pl.num_programs(0) - 1)
    def _():
        hN = _layernorm(x_acc[...], lnf_g_ref[...], lnf_b_ref[...])
        hid_ref[...] = hN.reshape(B, S, H)
        hbf16_ref[...] = hN.astype(jnp.bfloat16)


def lm_head_kernel(h_ref, w_ref, o_ref):
    """Tied LM head: one lane-dense vocab tile per grid step (padded columns
    of the final tile are masked on store into the unpadded output)."""
    o_ref[...] = jnp.dot(h_ref[...], w_ref[...],
                         preferred_element_type=jnp.float32)


# --------------------------------------------------------------------------
# Pallas wrappers
# --------------------------------------------------------------------------
def run_gpt2_stack(x, p, num_heads):
    B, S, H = x.shape
    BS = B * S
    L = p['wqkv'].shape[0]
    sq = pl.Squeezed()
    q_tile = _pick_q_tile(S)

    wmap = lambda l: (l, 0, 0)       # per-layer weights
    cmap3 = lambda l: (0, 0, 0)      # layer-invariant 3-D blocks
    cmap2 = lambda l: (0, 0)         # layer-invariant 2-D blocks

    in_specs = [
        pl.BlockSpec((B, S, H), cmap3),           # embeddings
        pl.BlockSpec((sq, 1, H), wmap),           # ln1_g
        pl.BlockSpec((sq, 1, H), wmap),           # ln1_b
        pl.BlockSpec((sq, H, 3 * H), wmap),       # wqkv
        pl.BlockSpec((sq, 1, 3 * H), wmap),       # bqkv
        pl.BlockSpec((sq, H, H), wmap),           # wo
        pl.BlockSpec((sq, 1, H), wmap),           # bo
        pl.BlockSpec((sq, 1, H), wmap),           # ln2_g
        pl.BlockSpec((sq, 1, H), wmap),           # ln2_b
        pl.BlockSpec((sq, H, 4 * H), wmap),       # wfc
        pl.BlockSpec((sq, 1, 4 * H), wmap),       # bfc
        pl.BlockSpec((sq, 4 * H, H), wmap),       # wproj
        pl.BlockSpec((sq, 1, H), wmap),           # bproj
        pl.BlockSpec((1, H), cmap2),              # lnf_g
        pl.BlockSpec((1, H), cmap2),              # lnf_b
    ]
    out_specs = (pl.BlockSpec((B, S, H), cmap3),
                 pl.BlockSpec((BS, H), cmap2))
    out_shape = (jax.ShapeDtypeStruct((B, S, H), jnp.float32),
                 jax.ShapeDtypeStruct((BS, H), jnp.bfloat16))

    return pl.pallas_call(
        functools.partial(gpt2_stack_kernel, num_heads=num_heads, q_tile=q_tile),
        out_shape=out_shape,
        grid_spec=pltpu.PrefetchScalarGridSpec(
            num_scalar_prefetch=0,
            grid=(L,),
            in_specs=in_specs,
            out_specs=out_specs,
            scratch_shapes=[
                pltpu.VMEM((BS, H), jnp.float32),      # residual accumulator
                pltpu.VMEM((S, S), jnp.float32),       # causal additive bias
                pltpu.VMEM((B, S, H), jnp.bfloat16),   # attention output
                pltpu.VMEM((B, S, H), jnp.bfloat16),   # q (read in q-tiles)
            ]),
        compiler_params=pltpu.CompilerParams(
            dimension_semantics=("arbitrary",),
            vmem_limit_bytes=_vmem_limit_bytes()),
    )(x,
      p['ln1_g'], p['ln1_b'], p['wqkv'], p['bqkv'],
      p['wo'], p['bo'], p['ln2_g'], p['ln2_b'],
      p['wfc'], p['bfc'], p['wproj'], p['bproj'],
      p['lnf_g'], p['lnf_b'])


def run_lm_head(h_bf16, wte_t, vocab_size, tile_v):
    BS, H = h_bf16.shape
    Vp = wte_t.shape[1]
    assert Vp % tile_v == 0
    return pl.pallas_call(
        lm_head_kernel,
        out_shape=jax.ShapeDtypeStruct((BS, vocab_size), jnp.float32),
        grid_spec=pltpu.PrefetchScalarGridSpec(
            num_scalar_prefetch=0,
            grid=(Vp // tile_v,),
            in_specs=[pl.BlockSpec((BS, H), lambda j: (0, 0)),
                      pl.BlockSpec((H, tile_v), lambda j: (0, j))],
            out_specs=pl.BlockSpec((BS, tile_v), lambda j: (0, j))),
        compiler_params=pltpu.CompilerParams(
            dimension_semantics=("parallel",),
            vmem_limit_bytes=_vmem_limit_bytes()),
    )(h_bf16, wte_t)


# --------------------------------------------------------------------------
# Deterministic parameter init (GPT-2-style shapes, synthetic values)
# --------------------------------------------------------------------------
def init_gpt2_params(key, vocab_size, hidden_size, num_layers, num_heads,
                     max_positions=1024, lm_tile_v=1024):
    H, L, std = hidden_size, num_layers, 0.02
    hd = H // num_heads
    keys = jax.random.split(key, 6)

    wte = std * jax.random.normal(keys[0], (vocab_size, H), jnp.float32)
    wpe = std * jax.random.normal(keys[1], (max_positions, H), jnp.float32)
    # pre-transposed, vocab-padded bf16 copy of wte for the (tied) LM head
    vp = int(lm_tile_v * pl.cdiv(vocab_size, lm_tile_v))
    wte_t = jnp.zeros((H, vp), jnp.bfloat16).at[:, :vocab_size].set(
        wte.T.astype(jnp.bfloat16))

    # fold the 1/sqrt(head_dim) attention scale into the q columns at init
    scale = 1.0 / math.sqrt(hd)
    wqkv = std * jax.random.normal(keys[2], (L, H, 3 * H), jnp.float32)
    wqkv = wqkv.at[:, :, :H].multiply(scale).astype(jnp.bfloat16)
    bqkv = jnp.zeros((L, 1, 3 * H), jnp.float32)
    bqkv = bqkv.at[:, :, :H].multiply(scale)      # no-op for zeros; keeps recipe right

    def w(k, shape):
        return (std * jax.random.normal(k, shape, jnp.float32)).astype(jnp.bfloat16)

    return {
        'wte': wte, 'wpe': wpe, 'wte_t': wte_t,
        'lnf_g': jnp.ones((1, H), jnp.float32),
        'lnf_b': jnp.zeros((1, H), jnp.float32),
        'ln1_g': jnp.ones((L, 1, H), jnp.float32),
        'ln1_b': jnp.zeros((L, 1, H), jnp.float32),
        'ln2_g': jnp.ones((L, 1, H), jnp.float32),
        'ln2_b': jnp.zeros((L, 1, H), jnp.float32),
        'wqkv': wqkv,
        'bqkv': bqkv,
        'wo': w(keys[3], (L, H, H)),
        'bo': jnp.zeros((L, 1, H), jnp.float32),
        'wfc': w(keys[4], (L, H, 4 * H)),
        'bfc': jnp.zeros((L, 1, 4 * H), jnp.float32),
        'wproj': w(keys[5], (L, 4 * H, H)),
        'bproj': jnp.zeros((L, 1, H), jnp.float32),
    }


# --------------------------------------------------------------------------
# Module-level wrapper mirroring CustomGPT2LMHeadModel.forward semantics
# --------------------------------------------------------------------------
class CustomGPT2LMHeadModelPallas:
    def __init__(self, vocab_size=512, hidden_size=64, num_layers=2,
                 num_heads=4, max_positions=1024, lm_tile_v=1024, key=None):
        if key is None:
            key = jax.random.PRNGKey(0)
        assert hidden_size % num_heads == 0
        self.vocab_size = vocab_size
        self.dim = hidden_size
        self.num_layers = num_layers
        self.num_heads = num_heads
        # lane-dense vocab tile (multiple of 128, no bigger than needed)
        self.lm_tile_v = max(128, min(lm_tile_v,
                                      128 * int(pl.cdiv(vocab_size, 128))))
        self.params = init_gpt2_params(key, vocab_size, hidden_size,
                                       num_layers, num_heads,
                                       max_positions=max_positions,
                                       lm_tile_v=self.lm_tile_v)

    def forward(self, inp, cached_kv=None, mask=None,
                return_intermediates=False, return_embed_with_cache_kv=False):
        # --- replicate the input-preprocessing logic of the torch module ---
        if not isinstance(inp, list):
            inp = [inp]
        x = []
        for t in inp:
            if jnp.issubdtype(t.dtype, jnp.integer):
                x.append(t.astype(jnp.int32))
            else:
                x.append(jnp.argmax(t, axis=-1).astype(jnp.int32)
                         if t.ndim == 3 else t.astype(jnp.int32))
        in_ids = jnp.concatenate(x, axis=1)                    # [B, S]

        # TODO(synk): cached_kv (incremental decoding) and attention_mask are
        # not supported in this synthetic Pallas port; full causal prefill only.
        del cached_kv, mask

        p = self.params
        B, S = in_ids.shape
        if S > p['wpe'].shape[0]:
            raise ValueError(
                f"sequence length {S} exceeds max_positions {p['wpe'].shape[0]}")

        # Embedding gather (plain-JAX glue).
        h = jnp.take(p['wte'], in_ids, axis=0) + p['wpe'][:S][None]   # [B,S,H]

        # All transformer blocks + fused ln_f in one pipelined pallas_call.
        hidden, h_bf16 = run_gpt2_stack(h, p, self.num_heads)

        # Vocab-tiled tied LM head, writes unpadded logits directly.
        logits2d = run_lm_head(h_bf16, p['wte_t'], self.vocab_size,
                               self.lm_tile_v)
        logits = logits2d.reshape(B, S, self.vocab_size)

        next_cached_kv = None  # TODO(synk): expose per-layer K/V cache.
        if return_embed_with_cache_kv:
            return hidden, next_cached_kv
        if return_intermediates:
            return logits, hidden, next_cached_kv
        return logits

    __call__ = forward


# --------------------------------------------------------------------------
if __name__ == "__main__":
    key = jax.random.PRNGKey(0)
    k_model, k_ids = jax.random.split(key)

    VOCAB, HIDDEN, LAYERS, HEADS = 512, 64, 2, 4
    B, S = 2, 8

    model = CustomGPT2LMHeadModelPallas(vocab_size=VOCAB, hidden_size=HIDDEN,
                                        num_layers=LAYERS, num_heads=HEADS,
                                        key=k_model)

    in_ids = jax.random.randint(k_ids, (B, S), 0, VOCAB, dtype=jnp.int32)

    logits = model(in_ids)
    logits = jax.block_until_ready(logits)
    assert logits.shape == (B, S, VOCAB) and logits.dtype == jnp.float32
    assert bool(jnp.isfinite(logits).all())

    # exercise the intermediate-returning path too
    logits2, hidden, _ = model(in_ids, return_intermediates=True)
    jax.block_until_ready((logits2, hidden))
    assert hidden.shape == (B, S, HIDDEN)
    assert bool(jnp.isfinite(hidden).all())

    print("KERNEL_OK")
</pallas_src>

<mosaic_0001>
module attributes {stable_mosaic.version = 11 : i64} {
  func.func @gpt2_stack_kernel(%arg0: i32, %arg1: memref<2x8x64xf32, #tpu.memory_space<vmem>>, %arg2: memref<1x1x64xf32, #tpu.memory_space<vmem>>, %arg3: memref<1x1x64xf32, #tpu.memory_space<vmem>>, %arg4: memref<1x64x192xbf16, #tpu.memory_space<vmem>>, %arg5: memref<1x1x192xf32, #tpu.memory_space<vmem>>, %arg6: memref<1x64x64xbf16, #tpu.memory_space<vmem>>, %arg7: memref<1x1x64xf32, #tpu.memory_space<vmem>>, %arg8: memref<1x1x64xf32, #tpu.memory_space<vmem>>, %arg9: memref<1x1x64xf32, #tpu.memory_space<vmem>>, %arg10: memref<1x64x256xbf16, #tpu.memory_space<vmem>>, %arg11: memref<1x1x256xf32, #tpu.memory_space<vmem>>, %arg12: memref<1x256x64xbf16, #tpu.memory_space<vmem>>, %arg13: memref<1x1x64xf32, #tpu.memory_space<vmem>>, %arg14: memref<1x64xf32, #tpu.memory_space<vmem>>, %arg15: memref<1x64xf32, #tpu.memory_space<vmem>>, %arg16: memref<2x8x64xf32, #tpu.memory_space<vmem>>, %arg17: memref<16x64xbf16, #tpu.memory_space<vmem>>, %arg18: memref<16x64xf32, #tpu.memory_space<vmem>>, %arg19: memref<8x8xf32, #tpu.memory_space<vmem>>, %arg20: memref<2x8x64xbf16, #tpu.memory_space<vmem>>, %arg21: memref<2x8x64xbf16, #tpu.memory_space<vmem>>) attributes {dimension_semantics = [#tpu.dimension_semantics<arbitrary>], iteration_bounds = array<i64: 2>, scalar_prefetch = 0 : i64, scratch_operands = 4 : i64, tpu.core_type = #tpu.core_type<tc>, window_params = [{pipeline_mode = #tpu.pipeline_mode<synchronous>, transform_indices = @transform_0, window_bounds = array<i64: 2, 8, 64>}, {transform_indices = @transform_1, window_bounds = array<i64: 1, 1, 64>}, {transform_indices = @transform_2, window_bounds = array<i64: 1, 1, 64>}, {transform_indices = @transform_3, window_bounds = array<i64: 1, 64, 192>}, {transform_indices = @transform_4, window_bounds = array<i64: 1, 1, 192>}, {transform_indices = @transform_5, window_bounds = array<i64: 1, 64, 64>}, {transform_indices = @transform_6, window_bounds = array<i64: 1, 1, 64>}, {transform_indices = @transform_7, window_bounds = array<i64: 1, 1, 64>}, {transform_indices = @transform_8, window_bounds = array<i64: 1, 1, 64>}, {transform_indices = @transform_9, window_bounds = array<i64: 1, 64, 256>}, {transform_indices = @transform_10, window_bounds = array<i64: 1, 1, 256>}, {transform_indices = @transform_11, window_bounds = array<i64: 1, 256, 64>}, {transform_indices = @transform_12, window_bounds = array<i64: 1, 1, 64>}, {pipeline_mode = #tpu.pipeline_mode<synchronous>, transform_indices = @transform_13, window_bounds = array<i64: 1, 64>}, {pipeline_mode = #tpu.pipeline_mode<synchronous>, transform_indices = @transform_14, window_bounds = array<i64: 1, 64>}, {pipeline_mode = #tpu.pipeline_mode<synchronous>, transform_indices = @transform_15, window_bounds = array<i64: 2, 8, 64>}, {pipeline_mode = #tpu.pipeline_mode<synchronous>, transform_indices = @transform_16, window_bounds = array<i64: 16, 64>}]} {
    %c0_i32 = arith.constant 0 : i32
    %0 = arith.cmpi eq, %arg0, %c0_i32 : i32
    %1 = arith.extui %0 : i1 to i32
    %c0_i32_0 = arith.constant 0 : i32
    %2 = arith.cmpi ne, %1, %c0_i32_0 : i32
    scf.if %2 {
      %c0_116 = arith.constant 0 : index
      %c0_117 = arith.constant 0 : index
      %c0_118 = arith.constant 0 : index
      %234 = vector.load %arg1[%c0_116, %c0_117, %c0_118] : memref<2x8x64xf32, #tpu.memory_space<vmem>>, vector<2x8x64xf32>
      %235 = vector.shape_cast %234 : vector<2x8x64xf32> to vector<16x64xf32>
      %c0_119 = arith.constant 0 : index
      %c0_120 = arith.constant 0 : index
      %236 = vector.load %arg18[%c0_119, %c0_120] : memref<16x64xf32, #tpu.memory_space<vmem>>, vector<16x64xf32>
      tpu.vector_store %arg18[%c0_119, %c0_120], %235 {strides = array<i32>} : memref<16x64xf32, #tpu.memory_space<vmem>>, vector<16x64xf32>,
      %237 = tpu.iota {dimensions = array<i32: 0>} : vector<8x8xi32>
      %238 = tpu.iota {dimensions = array<i32: 1>} : vector<8x8xi32>
      %239 = arith.cmpi sge, %237, %238 : vector<8x8xi32>
      %cst_121 = arith.constant 0.000000e+00 : f32
      %cst_122 = arith.constant -1.000000e+09 : f32
      %240 = vector.broadcast %cst_121 : f32 to vector<8x8xf32>
      %241 = vector.broadcast %cst_122 : f32 to vector<8x8xf32>
      %242 = arith.select %239, %240, %241 : vector<8x8xi1>, vector<8x8xf32>
      %c0_123 = arith.constant 0 : index
      %c0_124 = arith.constant 0 : index
      %243 = vector.load %arg19[%c0_123, %c0_124] : memref<8x8xf32, #tpu.memory_space<vmem>>, vector<8x8xf32>
      tpu.vector_store %arg19[%c0_123, %c0_124], %242 {strides = array<i32>} : memref<8x8xf32, #tpu.memory_space<vmem>>, vector<8x8xf32>,
    } else {
    }
    %c0 = arith.constant 0 : index
    %c0_1 = arith.constant 0 : index
    %3 = vector.load %arg18[%c0, %c0_1] : memref<16x64xf32, #tpu.memory_space<vmem>>, vector<16x64xf32>
    %c0_2 = arith.constant 0 : index
    %c0_3 = arith.constant 0 : index
    %c0_4 = arith.constant 0 : index
    %4 = vector.load %arg2[%c0_2, %c0_3, %c0_4] : memref<1x1x64xf32, #tpu.memory_space<vmem>>, vector<1x1x64xf32>
    %5 = vector.shape_cast %4 : vector<1x1x64xf32> to vector<1x64xf32>
    %c0_5 = arith.constant 0 : index
    %c0_6 = arith.constant 0 : index
    %c0_7 = arith.constant 0 : index
    %6 = vector.load %arg3[%c0_5, %c0_6, %c0_7] : memref<1x1x64xf32, #tpu.memory_space<vmem>>, vector<1x1x64xf32>
    %7 = vector.shape_cast %6 : vector<1x1x64xf32> to vector<1x64xf32>
    %cst = arith.constant dense<0.000000e+00> : vector<16xf32>
    %8 = vector.multi_reduction <add>, %3, %cst [1] : vector<16x64xf32> to vector<16xf32>
    %9 = vector.shape_cast %8 : vector<16xf32> to vector<16x1xf32>
    %cst_8 = arith.constant 6.400000e+01 : f32
    %10 = vector.broadcast %cst_8 : f32 to vector<16x1xf32>
    %11 = arith.divf %9, %10 : vector<16x1xf32>
    %12 = vector.broadcast %11 : vector<16x1xf32> to vector<16x64xf32>
    %13 = arith.subf %3, %12 : vector<16x64xf32>
    %14 = arith.mulf %13, %13 : vector<16x64xf32>
    %cst_9 = arith.constant dense<0.000000e+00> : vector<16xf32>
    %15 = vector.multi_reduction <add>, %14, %cst_9 [1] : vector<16x64xf32> to vector<16xf32>
    %16 = vector.shape_cast %15 : vector<16xf32> to vector<16x1xf32>
    %cst_10 = arith.constant 6.400000e+01 : f32
    %17 = vector.broadcast %cst_10 : f32 to vector<16x1xf32>
    %18 = arith.divf %16, %17 : vector<16x1xf32>
    %19 = vector.broadcast %11 : vector<16x1xf32> to vector<16x64xf32>
    %20 = arith.subf %3, %19 : vector<16x64xf32>
    %cst_11 = arith.constant 9.99999974E-6 : f32
    %21 = vector.broadcast %cst_11 : f32 to vector<16x1xf32>
    %22 = arith.addf %18, %21 : vector<16x1xf32>
    %23 = math.rsqrt %22 : vector<16x1xf32>
    %24 = vector.broadcast %23 : vector<16x1xf32> to vector<16x64xf32>
    %25 = arith.mulf %20, %24 : vector<16x64xf32>
    %26 = vector.broadcast %5 : vector<1x64xf32> to vector<16x64xf32>
    %27 = arith.mulf %25, %26 : vector<16x64xf32>
    %28 = vector.broadcast %7 : vector<1x64xf32> to vector<16x64xf32>
    %29 = arith.addf %27, %28 : vector<16x64xf32>
    %30 = arith.truncf %29 : vector<16x64xf32> to vector<16x64xbf16>
    %c0_12 = arith.constant 0 : index
    %c0_13 = arith.constant 0 : index
    %c0_14 = arith.constant 0 : index
    %31 = vector.load %arg4[%c0_12, %c0_13, %c0_14] : memref<1x64x192xbf16, #tpu.memory_space<vmem>>, vector<1x64x192xbf16>
    %32 = vector.shape_cast %31 : vector<1x64x192xbf16> to vector<64x192xbf16>
    %cst_15 = arith.constant dense<0.000000e+00> : vector<16x192xf32>
    %33 = tpu.matmul %30, %32, %cst_15 {dimension_numbers = #tpu.dot_dimension_numbers<[1], [0], [0], [1], [0, 0, 1, 1], [], []>} : vector<16x64xbf16>, vector<64x192xbf16>, vector<16x192xf32> -> vector<16x192xf32>
    %c0_16 = arith.constant 0 : index
    %c0_17 = arith.constant 0 : index
    %c0_18 = arith.constant 0 : index
    %34 = vector.load %arg5[%c0_16, %c0_17, %c0_18] : memref<1x1x192xf32, #tpu.memory_space<vmem>>, vector<1x1x192xf32>
    %35 = vector.shape_cast %34 : vector<1x1x192xf32> to vector<1x192xf32>
    %36 = vector.broadcast %35 : vector<1x192xf32> to vector<16x192xf32>
    %37 = arith.addf %33, %36 : vector<16x192xf32>
    %38 = vector.extract_strided_slice %37 {offsets = [0, 0], sizes = [16, 64], strides = [1, 1]} : vector<16x192xf32> to vector<16x64xf32>
    %39 = vector.shape_cast %38 : vector<16x64xf32> to vector<2x8x64xf32>
    %40 = arith.truncf %39 : vector<2x8x64xf32> to vector<2x8x64xbf16>
    %c0_19 = arith.constant 0 : index
    %c0_20 = arith.constant 0 : index
    %c0_21 = arith.constant 0 : index
    %41 = vector.load %arg21[%c0_19, %c0_20, %c0_21] : memref<2x8x64xbf16, #tpu.memory_space<vmem>>, vector<2x8x64xbf16>
    tpu.vector_store %arg21[%c0_19, %c0_20, %c0_21], %40 {strides = array<i32>} : memref<2x8x64xbf16, #tpu.memory_space<vmem>>, vector<2x8x64xbf16>,
    %42 = vector.extract_strided_slice %37 {offsets = [0, 64], sizes = [16, 64], strides = [1, 1]} : vector<16x192xf32> to vector<16x64xf32>
    %43 = vector.shape_cast %42 : vector<16x64xf32> to vector<2x8x64xf32>
    %44 = arith.truncf %43 : vector<2x8x64xf32> to vector<2x8x64xbf16>
    %45 = vector.extract_strided_slice %37 {offsets = [0, 128], sizes = [16, 64], strides = [1, 1]} : vector<16x192xf32> to vector<16x64xf32>
    %46 = vector.shape_cast %45 : vector<16x64xf32> to vector<2x8x64xf32>
    %47 = arith.truncf %46 : vector<2x8x64xf32> to vector<2x8x64xbf16>
    %48 = vector.extract_strided_slice %44 {offsets = [0, 0, 0], sizes = [2, 8, 16], strides = [1, 1, 1]} : vector<2x8x64xbf16> to vector<2x8x16xbf16>
    %49 = vector.extract_strided_slice %47 {offsets = [0, 0, 0], sizes = [2, 8, 16], strides = [1, 1, 1]} : vector<2x8x64xbf16> to vector<2x8x16xbf16>
    %c0_i32_22 = arith.constant 0 : i32
    %c1_i32 = arith.constant 1 : i32
    %50 = arith.muli %c0_i32_22, %c1_i32 : i32
    %c0_i32_23 = arith.constant 0 : i32
    %51 = arith.addi %c0_i32_23, %50 : i32
    %c8_i32 = arith.constant 8 : i32
    %52 = arith.muli %51, %c8_i32 : i32
    %53 = tpu.assume_multiple %52, 8 : i32
    %c0_24 = arith.constant 0 : index
    %54 = arith.index_cast %53 : i32 to index
    %c0_25 = arith.constant 0 : index
    %55 = vector.load %arg21[%c0_24, %54, %c0_25] : memref<2x8x64xbf16, #tpu.memory_space<vmem>>, vector<2x8x16xbf16>
    "tpu.trace_start"() <{level = 10 : i32, message = "bqd,bkd->bqk"}> : () -> ()
    %cst_26 = arith.constant dense<0.000000e+00> : vector<2x8x8xf32>
    %56 = tpu.matmul %55, %48, %cst_26 {dimension_numbers = #tpu.dot_dimension_numbers<[2], [2], [1], [1], [0, 0, 0, 1, 1, 1], [0], [0]>} : vector<2x8x16xbf16>, vector<2x8x16xbf16>, vector<2x8x8xf32> -> vector<2x8x8xf32>
    "tpu.trace_stop"() : () -> ()
    %57 = arith.index_cast %53 : i32 to index
    %c0_27 = arith.constant 0 : index
    %58 = vector.load %arg19[%57, %c0_27] : memref<8x8xf32, #tpu.memory_space<vmem>>, vector<8x8xf32>
    %59 = vector.shape_cast %58 : vector<8x8xf32> to vector<1x8x8xf32>
    %60 = vector.broadcast %59 : vector<1x8x8xf32> to vector<2x8x8xf32>
    %61 = arith.addf %56, %60 : vector<2x8x8xf32>
    %cst_28 = arith.constant dense<0xFF800000> : vector<2x8xf32>
    %62 = vector.multi_reduction <maximumf>, %61, %cst_28 [2] : vector<2x8x8xf32> to vector<2x8xf32>
    %63 = vector.shape_cast %62 : vector<2x8xf32> to vector<2x8x1xf32>
    %64 = vector.broadcast %63 : vector<2x8x1xf32> to vector<2x8x8xf32>
    %65 = arith.subf %61, %64 : vector<2x8x8xf32>
    %66 = math.exp %65 : vector<2x8x8xf32>
    %cst_29 = arith.constant dense<0.000000e+00> : vector<2x8xf32>
    %67 = vector.multi_reduction <add>, %66, %cst_29 [2] : vector<2x8x8xf32> to vector<2x8xf32>
    %68 = vector.shape_cast %67 : vector<2x8xf32> to vector<2x8x1xf32>
    %69 = tpu.reciprocal %68 {approx = true} : vector<2x8x1xf32> -> vector<2x8x1xf32>
    %70 = vector.broadcast %69 : vector<2x8x1xf32> to vector<2x8x8xf32>
    %71 = arith.mulf %66, %70 : vector<2x8x8xf32>
    %72 = arith.truncf %71 : vector<2x8x8xf32> to vector<2x8x8xbf16>
    "tpu.trace_start"() <{level = 10 : i32, message = "bqk,bkd->bqd"}> : () -> ()
    %cst_30 = arith.constant dense<0.000000e+00> : vector<2x8x16xf32>
    %73 = tpu.matmul %72, %49, %cst_30 {dimension_numbers = #tpu.dot_dimension_numbers<[2], [1], [1], [2], [0, 0, 0, 1, 1, 2], [0], [0]>} : vector<2x8x8xbf16>, vector<2x8x16xbf16>, vector<2x8x16xf32> -> vector<2x8x16xf32>
    "tpu.trace_stop"() : () -> ()
    %74 = arith.truncf %73 : vector<2x8x16xf32> to vector<2x8x16xbf16>
    %c0_31 = arith.constant 0 : index
    %75 = arith.index_cast %53 : i32 to index
    %c0_32 = arith.constant 0 : index
    %76 = vector.load %arg20[%c0_31, %75, %c0_32] : memref<2x8x64xbf16, #tpu.memory_space<vmem>>, vector<2x8x16xbf16>
    tpu.vector_store %arg20[%c0_31, %75, %c0_32], %74 {strides = array<i32>} : memref<2x8x64xbf16, #tpu.memory_space<vmem>>, vector<2x8x16xbf16>,
    %c1_i32_33 = arith.constant 1 : i32
    %77 = vector.extract_strided_slice %44 {offsets = [0, 0, 16], sizes = [2, 8, 16], strides = [1, 1, 1]} : vector<2x8x64xbf16> to vector<2x8x16xbf16>
    %78 = vector.extract_strided_slice %47 {offsets = [0, 0, 16], sizes = [2, 8, 16], strides = [1, 1, 1]} : vector<2x8x64xbf16> to vector<2x8x16xbf16>
    %c0_i32_34 = arith.constant 0 : i32
    %c1_i32_35 = arith.constant 1 : i32
    %79 = arith.muli %c0_i32_34, %c1_i32_35 : i32
    %c0_i32_36 = arith.constant 0 : i32
    %80 = arith.addi %c0_i32_36, %79 : i32
    %c8_i32_37 = arith.constant 8 : i32
    %81 = arith.muli %80, %c8_i32_37 : i32
    %82 = tpu.assume_multiple %81, 8 : i32
    %c0_38 = arith.constant 0 : index
    %83 = arith.index_cast %82 : i32 to index
    %c16 = arith.constant 16 : index
    %84 = vector.load %arg21[%c0_38, %83, %c16] : memref<2x8x64xbf16, #tpu.memory_space<vmem>>, vector<2x8x16xbf16>
    "tpu.trace_start"() <{level = 10 : i32, message = "bqd,bkd->bqk"}> : () -> ()
    %cst_39 = arith.constant dense<0.000000e+00> : vector<2x8x8xf32>
    %85 = tpu.matmul %84, %77, %cst_39 {dimension_numbers = #tpu.dot_dimension_numbers<[2], [2], [1], [1], [0, 0, 0, 1, 1, 1], [0], [0]>} : vector<2x8x16xbf16>, vector<2x8x16xbf16>, vector<2x8x8xf32> -> vector<2x8x8xf32>
    "tpu.trace_stop"() : () -> ()
    %86 = arith.index_cast %82 : i32 to index
    %c0_40 = arith.constant 0 : index
    %87 = vector.load %arg19[%86, %c0_40] : memref<8x8xf32, #tpu.memory_space<vmem>>, vector<8x8xf32>
    %88 = vector.shape_cast %87 : vector<8x8xf32> to vector<1x8x8xf32>
    %89 = vector.broadcast %88 : vector<1x8x8xf32> to vector<2x8x8xf32>
    %90 = arith.addf %85, %89 : vector<2x8x8xf32>
    %cst_41 = arith.constant dense<0xFF800000> : vector<2x8xf32>
    %91 = vector.multi_reduction <maximumf>, %90, %cst_41 [2] : vector<2x8x8xf32> to vector<2x8xf32>
    %92 = vector.shape_cast %91 : vector<2x8xf32> to vector<2x8x1xf32>
    %93 = vector.broadcast %92 : vector<2x8x1xf32> to vector<2x8x8xf32>
    %94 = arith.subf %90, %93 : vector<2x8x8xf32>
    %95 = math.exp %94 : vector<2x8x8xf32>
    %cst_42 = arith.constant dense<0.000000e+00> : vector<2x8xf32>
    %96 = vector.multi_reduction <add>, %95, %cst_42 [2] : vector<2x8x8xf32> to vector<2x8xf32>
    %97 = vector.shape_cast %96 : vector<2x8xf32> to vector<2x8x1xf32>
    %98 = tpu.reciprocal %97 {approx = true} : vector<2x8x1xf32> -> vector<2x8x1xf32>
    %99 = vector.broadcast %98 : vector<2x8x1xf32> to vector<2x8x8xf32>
    %100 = arith.mulf %95, %99 : vector<2x8x8xf32>
    %101 = arith.truncf %100 : vector<2x8x8xf32> to vector<2x8x8xbf16>
    "tpu.trace_start"() <{level = 10 : i32, message = "bqk,bkd->bqd"}> : () -> ()
    %cst_43 = arith.constant dense<0.000000e+00> : vector<2x8x16xf32>
    %102 = tpu.matmul %101, %78, %cst_43 {dimension_numbers = #tpu.dot_dimension_numbers<[2], [1], [1], [2], [0, 0, 0, 1, 1, 2], [0], [0]>} : vector<2x8x8xbf16>, vector<2x8x16xbf16>, vector<2x8x16xf32> -> vector<2x8x16xf32>
    "tpu.trace_stop"() : () -> ()
    %103 = arith.truncf %102 : vector<2x8x16xf32> to vector<2x8x16xbf16>
    %c0_44 = arith.constant 0 : index
    %104 = arith.index_cast %82 : i32 to index
    %c16_45 = arith.constant 16 : index
    %105 = vector.load %arg20[%c0_44, %104, %c16_45] : memref<2x8x64xbf16, #tpu.memory_space<vmem>>, vector<2x8x16xbf16>
    tpu.vector_store %arg20[%c0_44, %104, %c16_45], %103 {strides = array<i32>} : memref<2x8x64xbf16, #tpu.memory_space<vmem>>, vector<2x8x16xbf16>,
    %c1_i32_46 = arith.constant 1 : i32
    %106 = vector.extract_strided_slice %44 {offsets = [0, 0, 32], sizes = [2, 8, 16], strides = [1, 1, 1]} : vector<2x8x64xbf16> to vector<2x8x16xbf16>
    %107 = vector.extract_strided_slice %47 {offsets = [0, 0, 32], sizes = [2, 8, 16], strides = [1, 1, 1]} : vector<2x8x64xbf16> to vector<2x8x16xbf16>
    %c0_i32_47 = arith.constant 0 : i32
    %c1_i32_48 = arith.constant 1 : i32
    %108 = arith.muli %c0_i32_47, %c1_i32_48 : i32
    %c0_i32_49 = arith.constant 0 : i32
    %109 = arith.addi %c0_i32_49, %108 : i32
    %c8_i32_50 = arith.constant 8 : i32
    %110 = arith.muli %109, %c8_i32_50 : i32
    %111 = tpu.assume_multiple %110, 8 : i32
    %c0_51 = arith.constant 0 : index
    %112 = arith.index_cast %111 : i32 to index
    %c32 = arith.constant 32 : index
    %113 = vector.load %arg21[%c0_51, %112, %c32] : memref<2x8x64xbf16, #tpu.memory_space<vmem>>, vector<2x8x16xbf16>
    "tpu.trace_start"() <{level = 10 : i32, message = "bqd,bkd->bqk"}> : () -> ()
    %cst_52 = arith.constant dense<0.000000e+00> : vector<2x8x8xf32>
    %114 = tpu.matmul %113, %106, %cst_52 {dimension_numbers = #tpu.dot_dimension_numbers<[2], [2], [1], [1], [0, 0, 0, 1, 1, 1], [0], [0]>} : vector<2x8x16xbf16>, vector<2x8x16xbf16>, vector<2x8x8xf32> -> vector<2x8x8xf32>
    "tpu.trace_stop"() : () -> ()
    %115 = arith.index_cast %111 : i32 to index
    %c0_53 = arith.constant 0 : index
    %116 = vector.load %arg19[%115, %c0_53] : memref<8x8xf32, #tpu.memory_space<vmem>>, vector<8x8xf32>
    %117 = vector.shape_cast %116 : vector<8x8xf32> to vector<1x8x8xf32>
    %118 = vector.broadcast %117 : vector<1x8x8xf32> to vector<2x8x8xf32>
    %119 = arith.addf %114, %118 : vector<2x8x8xf32>
    %cst_54 = arith.constant dense<0xFF800000> : vector<2x8xf32>
    %120 = vector.multi_reduction <maximumf>, %119, %cst_54 [2] : vector<2x8x8xf32> to vector<2x8xf32>
    %121 = vector.shape_cast %120 : vector<2x8xf32> to vector<2x8x1xf32>
    %122 = vector.broadcast %121 : vector<2x8x1xf32> to vector<2x8x8xf32>
    %123 = arith.subf %119, %122 : vector<2x8x8xf32>
    %124 = math.exp %123 : vector<2x8x8xf32>
    %cst_55 = arith.constant dense<0.000000e+00> : vector<2x8xf32>
    %125 = vector.multi_reduction <add>, %124, %cst_55 [2] : vector<2x8x8xf32> to vector<2x8xf32>
    %126 = vector.shape_cast %125 : vector<2x8xf32> to vector<2x8x1xf32>
    %127 = tpu.reciprocal %126 {approx = true} : vector<2x8x1xf32> -> vector<2x8x1xf32>
    %128 = vector.broadcast %127 : vector<2x8x1xf32> to vector<2x8x8xf32>
    %129 = arith.mulf %124, %128 : vector<2x8x8xf32>
    %130 = arith.truncf %129 : vector<2x8x8xf32> to vector<2x8x8xbf16>
    "tpu.trace_start"() <{level = 10 : i32, message = "bqk,bkd->bqd"}> : () -> ()
    %cst_56 = arith.constant dense<0.000000e+00> : vector<2x8x16xf32>
    %131 = tpu.matmul %130, %107, %cst_56 {dimension_numbers = #tpu.dot_dimension_numbers<[2], [1], [1], [2], [0, 0, 0, 1, 1, 2], [0], [0]>} : vector<2x8x8xbf16>, vector<2x8x16xbf16>, vector<2x8x16xf32> -> vector<2x8x16xf32>
    "tpu.trace_stop"() : () -> ()
    %132 = arith.truncf %131 : vector<2x8x16xf32> to vector<2x8x16xbf16>
    %c0_57 = arith.constant 0 : index
    %133 = arith.index_cast %111 : i32 to index
    %c32_58 = arith.constant 32 : index
    %134 = vector.load %arg20[%c0_57, %133, %c32_58] : memref<2x8x64xbf16, #tpu.memory_space<vmem>>, vector<2x8x16xbf16>
    tpu.vector_store %arg20[%c0_57, %133, %c32_58], %132 {strides = array<i32>} : memref<2x8x64xbf16, #tpu.memory_space<vmem>>, vector<2x8x16xbf16>,
    %c1_i32_59 = arith.constant 1 : i32
    %135 = vector.extract_strided_slice %44 {offsets = [0, 0, 48], sizes = [2, 8, 16], strides = [1, 1, 1]} : vector<2x8x64xbf16> to vector<2x8x16xbf16>
    %136 = vector.extract_strided_slice %47 {offsets = [0, 0, 48], sizes = [2, 8, 16], strides = [1, 1, 1]} : vector<2x8x64xbf16> to vector<2x8x16xbf16>
    %c0_i32_60 = arith.constant 0 : i32
    %c1_i32_61 = arith.constant 1 : i32
    %137 = arith.muli %c0_i32_60, %c1_i32_61 : i32
    %c0_i32_62 = arith.constant 0 : i32
    %138 = arith.addi %c0_i32_62, %137 : i32
    %c8_i32_63 = arith.constant 8 : i32
    %139 = arith.muli %138, %c8_i32_63 : i32
    %140 = tpu.assume_multiple %139, 8 : i32
    %c0_64 = arith.constant 0 : index
    %141 = arith.index_cast %140 : i32 to index
    %c48 = arith.constant 48 : index
    %142 = vector.load %arg21[%c0_64, %141, %c48] : memref<2x8x64xbf16, #tpu.memory_space<vmem>>, vector<2x8x16xbf16>
    "tpu.trace_start"() <{level = 10 : i32, message = "bqd,bkd->bqk"}> : () -> ()
    %cst_65 = arith.constant dense<0.000000e+00> : vector<2x8x8xf32>
    %143 = tpu.matmul %142, %135, %cst_65 {dimension_numbers = #tpu.dot_dimension_numbers<[2], [2], [1], [1], [0, 0, 0, 1, 1, 1], [0], [0]>} : vector<2x8x16xbf16>, vector<2x8x16xbf16>, vector<2x8x8xf32> -> vector<2x8x8xf32>
    "tpu.trace_stop"() : () -> ()
    %144 = arith.index_cast %140 : i32 to index
    %c0_66 = arith.constant 0 : index
    %145 = vector.load %arg19[%144, %c0_66] : memref<8x8xf32, #tpu.memory_space<vmem>>, vector<8x8xf32>
    %146 = vector.shape_cast %145 : vector<8x8xf32> to vector<1x8x8xf32>
    %147 = vector.broadcast %146 : vector<1x8x8xf32> to vector<2x8x8xf32>
    %148 = arith.addf %143, %147 : vector<2x8x8xf32>
    %cst_67 = arith.constant dense<0xFF800000> : vector<2x8xf32>
    %149 = vector.multi_reduction <maximumf>, %148, %cst_67 [2] : vector<2x8x8xf32> to vector<2x8xf32>
    %150 = vector.shape_cast %149 : vector<2x8xf32> to vector<2x8x1xf32>
    %151 = vector.broadcast %150 : vector<2x8x1xf32> to vector<2x8x8xf32>
    %152 = arith.subf %148, %151 : vector<2x8x8xf32>
    %153 = math.exp %152 : vector<2x8x8xf32>
    %cst_68 = arith.constant dense<0.000000e+00> : vector<2x8xf32>
    %154 = vector.multi_reduction <add>, %153, %cst_68 [2] : vector<2x8x8xf32> to vector<2x8xf32>
    %155 = vector.shape_cast %154 : vector<2x8xf32> to vector<2x8x1xf32>
    %156 = tpu.reciprocal %155 {approx = true} : vector<2x8x1xf32> -> vector<2x8x1xf32>
    %157 = vector.broadcast %156 : vector<2x8x1xf32> to vector<2x8x8xf32>
    %158 = arith.mulf %153, %157 : vector<2x8x8xf32>
    %159 = arith.truncf %158 : vector<2x8x8xf32> to vector<2x8x8xbf16>
    "tpu.trace_start"() <{level = 10 : i32, message = "bqk,bkd->bqd"}> : () -> ()
    %cst_69 = arith.constant dense<0.000000e+00> : vector<2x8x16xf32>
    %160 = tpu.matmul %159, %136, %cst_69 {dimension_numbers = #tpu.dot_dimension_numbers<[2], [1], [1], [2], [0, 0, 0, 1, 1, 2], [0], [0]>} : vector<2x8x8xbf16>, vector<2x8x16xbf16>, vector<2x8x16xf32> -> vector<2x8x16xf32>
    "tpu.trace_stop"() : () -> ()
    %161 = arith.truncf %160 : vector<2x8x16xf32> to vector<2x8x16xbf16>
    %c0_70 = arith.constant 0 : index
    %162 = arith.index_cast %140 : i32 to index
    %c48_71 = arith.constant 48 : index
    %163 = vector.load %arg20[%c0_70, %162, %c48_71] : memref<2x8x64xbf16, #tpu.memory_space<vmem>>, vector<2x8x16xbf16>
    tpu.vector_store %arg20[%c0_70, %162, %c48_71], %161 {strides = array<i32>} : memref<2x8x64xbf16, #tpu.memory_space<vmem>>, vector<2x8x16xbf16>,
    %c1_i32_72 = arith.constant 1 : i32
    %c0_73 = arith.constant 0 : index
    %c0_74 = arith.constant 0 : index
    %c0_75 = arith.constant 0 : index
    %164 = vector.load %arg20[%c0_73, %c0_74, %c0_75] : memref<2x8x64xbf16, #tpu.memory_space<vmem>>, vector<2x8x64xbf16>
    %165 = vector.shape_cast %164 : vector<2x8x64xbf16> to vector<16x64xbf16>
    %c0_76 = arith.constant 0 : index
    %c0_77 = arith.constant 0 : index
    %c0_78 = arith.constant 0 : index
    %166 = vector.load %arg6[%c0_76, %c0_77, %c0_78] : memref<1x64x64xbf16, #tpu.memory_space<vmem>>, vector<1x64x64xbf16>
    %167 = vector.shape_cast %166 : vector<1x64x64xbf16> to vector<64x64xbf16>
    %cst_79 = arith.constant dense<0.000000e+00> : vector<16x64xf32>
    %168 = tpu.matmul %165, %167, %cst_79 {dimension_numbers = #tpu.dot_dimension_numbers<[1], [0], [0], [1], [0, 0, 1, 1], [], []>} : vector<16x64xbf16>, vector<64x64xbf16>, vector<16x64xf32> -> vector<16x64xf32>
    %c0_80 = arith.constant 0 : index
    %c0_81 = arith.constant 0 : index
    %c0_82 = arith.constant 0 : index
    %169 = vector.load %arg7[%c0_80, %c0_81, %c0_82] : memref<1x1x64xf32, #tpu.memory_space<vmem>>, vector<1x1x64xf32>
    %170 = vector.shape_cast %169 : vector<1x1x64xf32> to vector<1x64xf32>
    %171 = vector.broadcast %170 : vector<1x64xf32> to vector<16x64xf32>
    %172 = arith.addf %168, %171 : vector<16x64xf32>
    %173 = arith.addf %3, %172 : vector<16x64xf32>
    %c0_83 = arith.constant 0 : index
    %c0_84 = arith.constant 0 : index
    %c0_85 = arith.constant 0 : index
    %174 = vector.load %arg8[%c0_83, %c0_84, %c0_85] : memref<1x1x64xf32, #tpu.memory_space<vmem>>, vector<1x1x64xf32>
    %175 = vector.shape_cast %174 : vector<1x1x64xf32> to vector<1x64xf32>
    %c0_86 = arith.constant 0 : index
    %c0_87 = arith.constant 0 : index
    %c0_88 = arith.constant 0 : index
    %176 = vector.load %arg9[%c0_86, %c0_87, %c0_88] : memref<1x1x64xf32, #tpu.memory_space<vmem>>, vector<1x1x64xf32>
    %177 = vector.shape_cast %176 : vector<1x1x64xf32> to vector<1x64xf32>
    %cst_89 = arith.constant dense<0.000000e+00> : vector<16xf32>
    %178 = vector.multi_reduction <add>, %173, %cst_89 [1] : vector<16x64xf32> to vector<16xf32>
    %179 = vector.shape_cast %178 : vector<16xf32> to vector<16x1xf32>
    %cst_90 = arith.constant 6.400000e+01 : f32
    %180 = vector.broadcast %cst_90 : f32 to vector<16x1xf32>
    %181 = arith.divf %179, %180 : vector<16x1xf32>
    %182 = vector.broadcast %181 : vector<16x1xf32> to vector<16x64xf32>
    %183 = arith.subf %173, %182 : vector<16x64xf32>
    %184 = arith.mulf %183, %183 : vector<16x64xf32>
    %cst_91 = arith.constant dense<0.000000e+00> : vector<16xf32>
    %185 = vector.multi_reduction <add>, %184, %cst_91 [1] : vector<16x64xf32> to vector<16xf32>
    %186 = vector.shape_cast %185 : vector<16xf32> to vector<16x1xf32>
    %cst_92 = arith.constant 6.400000e+01 : f32
    %187 = vector.broadcast %cst_92 : f32 to vector<16x1xf32>
    %188 = arith.divf %186, %187 : vector<16x1xf32>
    %189 = vector.broadcast %181 : vector<16x1xf32> to vector<16x64xf32>
    %190 = arith.subf %173, %189 : vector<16x64xf32>
    %cst_93 = arith.constant 9.99999974E-6 : f32
    %191 = vector.broadcast %cst_93 : f32 to vector<16x1xf32>
    %192 = arith.addf %188, %191 : vector<16x1xf32>
    %193 = math.rsqrt %192 : vector<16x1xf32>
    %194 = vector.broadcast %193 : vector<16x1xf32> to vector<16x64xf32>
    %195 = arith.mulf %190, %194 : vector<16x64xf32>
    %196 = vector.broadcast %175 : vector<1x64xf32> to vector<16x64xf32>
    %197 = arith.mulf %195, %196 : vector<16x64xf32>
    %198 = vector.broadcast %177 : vector<1x64xf32> to vector<16x64xf32>
    %199 = arith.addf %197, %198 : vector<16x64xf32>
    %200 = arith.truncf %199 : vector<16x64xf32> to vector<16x64xbf16>
    %c0_94 = arith.constant 0 : index
    %c0_95 = arith.constant 0 : index
    %c0_96 = arith.constant 0 : index
    %201 = vector.load %arg10[%c0_94, %c0_95, %c0_96] : memref<1x64x256xbf16, #tpu.memory_space<vmem>>, vector<1x64x256xbf16>
    %202 = vector.shape_cast %201 : vector<1x64x256xbf16> to vector<64x256xbf16>
    %cst_97 = arith.constant dense<0.000000e+00> : vector<16x256xf32>
    %203 = tpu.matmul %200, %202, %cst_97 {dimension_numbers = #tpu.dot_dimension_numbers<[1], [0], [0], [1], [0, 0, 1, 1], [], []>} : vector<16x64xbf16>, vector<64x256xbf16>, vector<16x256xf32> -> vector<16x256xf32>
    %c0_98 = arith.constant 0 : index
    %c0_99 = arith.constant 0 : index
    %c0_100 = arith.constant 0 : index
    %204 = vector.load %arg11[%c0_98, %c0_99, %c0_100] : memref<1x1x256xf32, #tpu.memory_space<vmem>>, vector<1x1x256xf32>
    %205 = vector.shape_cast %204 : vector<1x1x256xf32> to vector<1x256xf32>
    %206 = vector.broadcast %205 : vector<1x256xf32> to vector<16x256xf32>
    %207 = arith.addf %203, %206 : vector<16x256xf32>
    %cst_101 = arith.constant 5.000000e-01 : f32
    %208 = vector.broadcast %cst_101 : f32 to vector<16x256xf32>
    %209 = arith.mulf %208, %207 : vector<16x256xf32>
    %cst_102 = arith.constant 4.471500e-02 : f32
    %210 = vector.broadcast %cst_102 : f32 to vector<16x256xf32>
    %211 = arith.mulf %210, %207 : vector<16x256xf32>
    %212 = arith.mulf %211, %207 : vector<16x256xf32>
    %213 = arith.mulf %212, %207 : vector<16x256xf32>
    %214 = arith.addf %207, %213 : vector<16x256xf32>
    %cst_103 = arith.constant 0.797884583 : f32
    %215 = vector.broadcast %cst_103 : f32 to vector<16x256xf32>
    %216 = arith.mulf %215, %214 : vector<16x256xf32>
    %217 = math.tanh %216 : vector<16x256xf32>
    %cst_104 = arith.constant 1.000000e+00 : f32
    %218 = vector.broadcast %cst_104 : f32 to vector<16x256xf32>
    %219 = arith.addf %218, %217 : vector<16x256xf32>
    %220 = arith.mulf %209, %219 : vector<16x256xf32>
    %221 = arith.truncf %220 : vector<16x256xf32> to vector<16x256xbf16>
    %c0_105 = arith.constant 0 : index
    %c0_106 = arith.constant 0 : index
    %c0_107 = arith.constant 0 : index
    %222 = vector.load %arg12[%c0_105, %c0_106, %c0_107] : memref<1x256x64xbf16, #tpu.memory_space<vmem>>, vector<1x256x64xbf16>
    %223 = vector.shape_cast %222 : vector<1x256x64xbf16> to vector<256x64xbf16>
    %cst_108 = arith.constant dense<0.000000e+00> : vector<16x64xf32>
    %224 = tpu.matmul %221, %223, %cst_108 {dimension_numbers = #tpu.dot_dimension_numbers<[1], [0], [0], [1], [0, 0, 1, 1], [], []>} : vector<16x256xbf16>, vector<256x64xbf16>, vector<16x64xf32> -> vector<16x64xf32>
    %c0_109 = arith.constant 0 : index
    %c0_110 = arith.constant 0 : index
    %c0_111 = arith.constant 0 : index
    %225 = vector.load %arg13[%c0_109, %c0_110, %c0_111] : memref<1x1x64xf32, #tpu.memory_space<vmem>>, vector<1x1x64xf32>
    %226 = vector.shape_cast %225 : vector<1x1x64xf32> to vector<1x64xf32>
    %227 = vector.broadcast %226 : vector<1x64xf32> to vector<16x64xf32>
    %228 = arith.addf %224, %227 : vector<16x64xf32>
    %229 = arith.addf %173, %228 : vector<16x64xf32>
    %c0_112 = arith.constant 0 : index
    %c0_113 = arith.constant 0 : index
    %230 = vector.load %arg18[%c0_112, %c0_113] : memref<16x64xf32, #tpu.memory_space<vmem>>, vector<16x64xf32>
    tpu.vector_store %arg18[%c0_112, %c0_113], %229 {strides = array<i32>} : memref<16x64xf32, #tpu.memory_space<vmem>>, vector<16x64xf32>,
    %c1_i32_114 = arith.constant 1 : i32
    %231 = arith.cmpi eq, %arg0, %c1_i32_114 : i32
    %232 = arith.extui %231 : i1 to i32
    %c0_i32_115 = arith.constant 0 : i32
    %233 = arith.cmpi ne, %232, %c0_i32_115 : i32
    scf.if %233 {
      %c0_116 = arith.constant 0 : index
      %c0_117 = arith.constant 0 : index
      %234 = vector.load %arg18[%c0_116, %c0_117] : memref<16x64xf32, #tpu.memory_space<vmem>>, vector<16x64xf32>
      %c0_118 = arith.constant 0 : index
      %c0_119 = arith.constant 0 : index
      %235 = vector.load %arg14[%c0_118, %c0_119] : memref<1x64xf32, #tpu.memory_space<vmem>>, vector<1x64xf32>
      %c0_120 = arith.constant 0 : index
      %c0_121 = arith.constant 0 : index
      %236 = vector.load %arg15[%c0_120, %c0_121] : memref<1x64xf32, #tpu.memory_space<vmem>>, vector<1x64xf32>
      %cst_122 = arith.constant dense<0.000000e+00> : vector<16xf32>
      %237 = vector.multi_reduction <add>, %234, %cst_122 [1] : vector<16x64xf32> to vector<16xf32>
      %238 = vector.shape_cast %237 : vector<16xf32> to vector<16x1xf32>
      %cst_123 = arith.constant 6.400000e+01 : f32
      %239 = vector.broadcast %cst_123 : f32 to vector<16x1xf32>
      %240 = arith.divf %238, %239 : vector<16x1xf32>
      %241 = vector.broadcast %240 : vector<16x1xf32> to vector<16x64xf32>
      %242 = arith.subf %234, %241 : vector<16x64xf32>
      %243 = arith.mulf %242, %242 : vector<16x64xf32>
      %cst_124 = arith.constant dense<0.000000e+00> : vector<16xf32>
      %244 = vector.multi_reduction <add>, %243, %cst_124 [1] : vector<16x64xf32> to vector<16xf32>
      %245 = vector.shape_cast %244 : vector<16xf32> to vector<16x1xf32>
      %cst_125 = arith.constant 6.400000e+01 : f32
      %246 = vector.broadcast %cst_125 : f32 to vector<16x1xf32>
      %247 = arith.divf %245, %246 : vector<16x1xf32>
      %248 = vector.broadcast %240 : vector<16x1xf32> to vector<16x64xf32>
      %249 = arith.subf %234, %248 : vector<16x64xf32>
      %cst_126 = arith.constant 9.99999974E-6 : f32
      %250 = vector.broadcast %cst_126 : f32 to vector<16x1xf32>
      %251 = arith.addf %247, %250 : vector<16x1xf32>
      %252 = math.rsqrt %251 : vector<16x1xf32>
      %253 = vector.broadcast %252 : vector<16x1xf32> to vector<16x64xf32>
      %254 = arith.mulf %249, %253 : vector<16x64xf32>
      %255 = vector.broadcast %235 : vector<1x64xf32> to vector<16x64xf32>
      %256 = arith.mulf %254, %255 : vector<16x64xf32>
      %257 = vector.broadcast %236 : vector<1x64xf32> to vector<16x64xf32>
      %258 = arith.addf %256, %257 : vector<16x64xf32>
      %259 = vector.shape_cast %258 : vector<16x64xf32> to vector<2x8x64xf32>
      %c0_127 = arith.constant 0 : index
      %c0_128 = arith.constant 0 : index
      %c0_129 = arith.constant 0 : index
      %260 = vector.load %arg16[%c0_127, %c0_128, %c0_129] : memref<2x8x64xf32, #tpu.memory_space<vmem>>, vector<2x8x64xf32>
      tpu.vector_store %arg16[%c0_127, %c0_128, %c0_129], %259 {strides = array<i32>} : memref<2x8x64xf32, #tpu.memory_space<vmem>>, vector<2x8x64xf32>,
      %261 = arith.truncf %258 : vector<16x64xf32> to vector<16x64xbf16>
      %c0_130 = arith.constant 0 : index
      %c0_131 = arith.constant 0 : index
      %262 = vector.load %arg17[%c0_130, %c0_131] : memref<16x64xbf16, #tpu.memory_space<vmem>>, vector<16x64xbf16>
      tpu.vector_store %arg17[%c0_130, %c0_131], %261 {strides = array<i32>} : memref<16x64xbf16, #tpu.memory_space<vmem>>, vector<16x64xbf16>,
    } else {
    }
    return
  }
  func.func @transform_0(%arg0: i32) -> (i32, i32, i32) {
    %c0_i32 = arith.constant 0 : i32
    %c0_i32_0 = arith.constant 0 : i32
    %c0_i32_1 = arith.constant 0 : i32
    %c0_i32_2 = arith.constant 0 : i32
    return %c0_i32, %c0_i32_0, %c0_i32_1 : i32, i32, i32
  }
  func.func @transform_1(%arg0: i32) -> (i32, i32, i32) {
    %c0_i32 = arith.constant 0 : i32
    %c0_i32_0 = arith.constant 0 : i32
    %c0_i32_1 = arith.constant 0 : i32
    return %arg0, %c0_i32, %c0_i32_0 : i32, i32, i32
  }
  func.func @transform_2(%arg0: i32) -> (i32, i32, i32) {
    %c0_i32 = arith.constant 0 : i32
    %c0_i32_0 = arith.constant 0 : i32
    %c0_i32_1 = arith.constant 0 : i32
    return %arg0, %c0_i32, %c0_i32_0 : i32, i32, i32
  }
  func.func @transform_3(%arg0: i32) -> (i32, i32, i32) {
    %c0_i32 = arith.constant 0 : i32
    %c0_i32_0 = arith.constant 0 : i32
    %c0_i32_1 = arith.constant 0 : i32
    return %arg0, %c0_i32, %c0_i32_0 : i32, i32, i32
  }
  func.func @transform_4(%arg0: i32) -> (i32, i32, i32) {
    %c0_i32 = arith.constant 0 : i32
    %c0_i32_0 = arith.constant 0 : i32
    %c0_i32_1 = arith.constant 0 : i32
    return %arg0, %c0_i32, %c0_i32_0 : i32, i32, i32
  }
  func.func @transform_5(%arg0: i32) -> (i32, i32, i32) {
    %c0_i32 = arith.constant 0 : i32
    %c0_i32_0 = arith.constant 0 : i32
    %c0_i32_1 = arith.constant 0 : i32
    return %arg0, %c0_i32, %c0_i32_0 : i32, i32, i32
  }
  func.func @transform_6(%arg0: i32) -> (i32, i32, i32) {
    %c0_i32 = arith.constant 0 : i32
    %c0_i32_0 = arith.constant 0 : i32
    %c0_i32_1 = arith.constant 0 : i32
    return %arg0, %c0_i32, %c0_i32_0 : i32, i32, i32
  }
  func.func @transform_7(%arg0: i32) -> (i32, i32, i32) {
    %c0_i32 = arith.constant 0 : i32
    %c0_i32_0 = arith.constant 0 : i32
    %c0_i32_1 = arith.constant 0 : i32
    return %arg0, %c0_i32, %c0_i32_0 : i32, i32, i32
  }
  func.func @transform_8(%arg0: i32) -> (i32, i32, i32) {
    %c0_i32 = arith.constant 0 : i32
    %c0_i32_0 = arith.constant 0 : i32
    %c0_i32_1 = arith.constant 0 : i32
    return %arg0, %c0_i32, %c0_i32_0 : i32, i32, i32
  }
  func.func @transform_9(%arg0: i32) -> (i32, i32, i32) {
    %c0_i32 = arith.constant 0 : i32
    %c0_i32_0 = arith.constant 0 : i32
    %c0_i32_1 = arith.constant 0 : i32
    return %arg0, %c0_i32, %c0_i32_0 : i32, i32, i32
  }
  func.func @transform_10(%arg0: i32) -> (i32, i32, i32) {
    %c0_i32 = arith.constant 0 : i32
    %c0_i32_0 = arith.constant 0 : i32
    %c0_i32_1 = arith.constant 0 : i32
    return %arg0, %c0_i32, %c0_i32_0 : i32, i32, i32
  }
  func.func @transform_11(%arg0: i32) -> (i32, i32, i32) {
    %c0_i32 = arith.constant 0 : i32
    %c0_i32_0 = arith.constant 0 : i32
    %c0_i32_1 = arith.constant 0 : i32
    return %arg0, %c0_i32, %c0_i32_0 : i32, i32, i32
  }
  func.func @transform_12(%arg0: i32) -> (i32, i32, i32) {
    %c0_i32 = arith.constant 0 : i32
    %c0_i32_0 = arith.constant 0 : i32
    %c0_i32_1 = arith.constant 0 : i32
    return %arg0, %c0_i32, %c0_i32_0 : i32, i32, i32
  }
  func.func @transform_13(%arg0: i32) -> (i32, i32) {
    %c0_i32 = arith.constant 0 : i32
    %c0_i32_0 = arith.constant 0 : i32
    %c0_i32_1 = arith.constant 0 : i32
    return %c0_i32, %c0_i32_0 : i32, i32
  }
  func.func @transform_14(%arg0: i32) -> (i32, i32) {
    %c0_i32 = arith.constant 0 : i32
    %c0_i32_0 = arith.constant 0 : i32
    %c0_i32_1 = arith.constant 0 : i32
    return %c0_i32, %c0_i32_0 : i32, i32
  }
  func.func @transform_15(%arg0: i32) -> (i32, i32, i32) {
    %c0_i32 = arith.constant 0 : i32
    %c0_i32_0 = arith.constant 0 : i32
    %c0_i32_1 = arith.constant 0 : i32
    %c0_i32_2 = arith.constant 0 : i32
    return %c0_i32, %c0_i32_0, %c0_i32_1 : i32, i32, i32
  }
  func.func @transform_16(%arg0: i32) -> (i32, i32) {
    %c0_i32 = arith.constant 0 : i32
    %c0_i32_0 = arith.constant 0 : i32
    %c0_i32_1 = arith.constant 0 : i32
    return %c0_i32, %c0_i32_0 : i32, i32
  }
}

</mosaic_0001>

<bundles_post_ra>
// kernel: tpu_custom_call.1
= control target key start
LH: loop header
LB: loop body
LE: loop exit
PB: predicated region body
PF: predicated region fallthrough
CT: control target
= control target key end

     0   :  { %s2960_s0 = inlined_call_operand.vmem [shape: f32[2,8,64], index: 0, kind: input, shape index: {}]   ;;  %s2961_s1 = inlined_call_operand.vmem [shape: f32[2,1,64], index: 1, kind: input, shape index: {}]   ;;  %s2962_s2 = inlined_call_operand.vmem [shape: f32[2,1,64], index: 2, kind: input, shape index: {}]   ;;  %s2963_s3 = inlined_call_operand.vmem [shape: bf16[2,64,192], index: 3, kind: input, shape index: {}]   ;;  %s2964_s4 = inlined_call_operand.vmem [shape: f32[2,1,192], index: 4, kind: input, shape index: {}]   ;;  %s2965_s5 = inlined_call_operand.vmem [shape: bf16[2,64,64], index: 5, kind: input, shape index: {}]   ;;  %s2966_s6 = inlined_call_operand.vmem [shape: f32[2,1,64], index: 6, kind: input, shape index: {}]   ;;  %s2967_s7 = inlined_call_operand.vmem [shape: f32[2,1,64], index: 7, kind: input, shape index: {}]   ;;  %s2968_s8 = inlined_call_operand.vmem [shape: f32[2,1,64], index: 8, kind: input, shape index: {}]   ;;  %s2969_s9 = inlined_call_operand.vmem [shape: bf16[2,64,256], index: 9, kind: input, shape index: {}]   ;;  %s2970_s10 = inlined_call_operand.vmem [shape: f32[2,1,256], index: 10, kind: input, shape index: {}]   ;;  %s2971_s11 = inlined_call_operand.vmem [shape: bf16[2,256,64], index: 11, kind: input, shape index: {}]   ;;  %s2972_s12 = inlined_call_operand.vmem [shape: f32[2,1,64], index: 12, kind: input, shape index: {}]   ;;  %s2973_s13 = inlined_call_operand.vmem [shape: f32[1,64], index: 13, kind: input, shape index: {}]   ;;  %s2974_s14 = inlined_call_operand.vmem [shape: f32[1,64], index: 14, kind: input, shape index: {}]   ;;  %s2975_s15 = inlined_call_operand.hbm [shape: f32[2,8,64], index: 15, kind: output, shape index: {0}]   ;;  %s2976_s16 = inlined_call_operand.hbm [shape: bf16[16,64], index: 16, kind: output, shape index: {1}]  }
   0x1   :  { %2979 = sst [smem:[#allocation13_spill]] %s2960_s0 }
   0x2   :  { %2980 = sst [smem:[#allocation14_spill]] %s2962_s2 }
   0x3   :  { %2981 = sst [smem:[#allocation15_spill]] %s2963_s3 }
   0x4   :  { %2982 = sst [smem:[#allocation16_spill]] %s2964_s4 }
   0x5   :  { %2983 = sst [smem:[#allocation17_spill]] %s2973_s13 }
   0x6   :  { %2984 = sst [smem:[#allocation18_spill]] %s2974_s14 }
   0x7   :  { %2985 = sst [smem:[#allocation19_spill]] %s2975_s15 }
   0x8   :  { %2986 = sst [smem:[#allocation20_spill]] %s2976_s16 }
   0x9   :  { %22 = vsyncpa [#allocation7], 0 }
   0xa   :  { %23 = vsyncpa [#allocation9], 0  ;;  %s2566_s21 = smov 0  }
   0xb LB: > { %2987 = sst [smem:[#allocation12_spill]] %s2465_s21  ;;  %s2572_s22 = sadd.s32 4294967295, %s2465_s21   ;;  %s2465_s21 = sphi %s2566_s21, %s29_s21  }
   0xc   : > { %p2058_p0 = scmp.ge.s32.totalorder %s2465_s21, 1  ;;  %p553_p1 = scmp.lt.s32.totalorder %s2465_s21, 3 }
   0xe   : > { %p554_p2 = pnand %p2058_p0, %p553_p1 }
   0xf   : > { %p639_p3 = scmp.lt.s32.totalorder (!%p554_p2), %s2572_s22, 1  ;;  %s2989_s3 = sld [smem:[#allocation15_spill]] (!%p554_p2) }
  0x10   : > { %557 = sbr.rel (%p554_p2) target bundleno = 2771 (0xad3), region = 80  ;;  %s2990_s4 = sld [smem:[#allocation16_spill]] (!%p554_p2) }
  0x11   : > { %p2069_p4 = scmp.ne.s32.totalorder (!%p554_p2), %s2572_s22, 0 }
  0x15   : > { %s2578_s23 = scalar_select %p639_p3, %s2572_s22, 1 }
  0x16   : > { %s2991_s18 = sld [smem:[#allocation13_spill]] (!%p2069_p4) }
  0x17   : > { %s2246_s30 = sshll.u32 %s2578_s23, 6  ;;  %s2061_s0 = sshll.u32 %s2578_s23, 1 }
  0x18   : > { %s2593_s19 = scalar_lea.vmem %s2989_s3, %s2246_s30  ;;  %s2598_s25 = scalar_lea.vmem %s2990_s4, %s2061_s0 }
  0x19   : > { %s2247_s21 = sshll.u32 %s2578_s23, 5  ;;  %s667_s20 = scalar_lea.vmem %s2968_s8, %s2578_s23 }
  0x1a   : > { %s2608_s28 = scalar_lea.vmem %s2965_s5, %s2247_s21  ;;  %s2621_s2 = scalar_lea.vmem %s2969_s9, %s2246_s30 }
  0x1b   : > { %s2626_s26 = scalar_lea.vmem %s2970_s10, %s2061_s0  ;;  %s2249_s14 = sshll.u32 %s2578_s23, 7 }
  0x1c   : > { %s2632_s13 = scalar_lea.vmem %s2971_s11, %s2249_s14  ;;  %s684_s3 = scalar_lea.vmem %s2972_s12, %s2578_s23 }
  0x1d   : > { %689 = sbr.rel (%p2069_p4) target bundleno = 41 (0x29), region = 84 }
  0x22   : > { %v690_v0 = vld [vmem:[%s2991_s18] sm:$0xff]  ;;  %vm692_vm0 = vcmask 523264   ;;  %v691_v1 = vld [vmem:[%s2991_s18 + $0x8] sm:$0xff]  ;;  %v695_v2 = vlaneseq  ;;  %vm701_vm1 = vcmask 64512   ;;  %v2467_v5 = vmov -1e+09  }
  0x23   : > { %693 = vst.msk [vmem:[#allocation2] sm:$0xff] %vm692_vm0, %v690_v0 }
  0x24   : > { %694 = vst.msk [vmem:[#allocation2 + $0x8] sm:$0xff] %vm692_vm0, %v691_v1  ;;  %v696_v3 = vshrl.u32 %v695_v2, 7  ;;  %v698_v4 = vand.u32 127, %v695_v2 }
  0x26   : > { %vm699_vm2 = vcmp.ge.s32.totalorder %v696_v3, %v698_v4 }
  0x27   : > { %v700_v6 = vsel %vm699_vm2, 0.0, %v2467_v5 }
  0x28   : > { %702 = vst.msk [vmem:[#allocation3] sm:$0xff] %vm701_vm1, %v700_v6 }
  0x29 PF: > { %vm707_vm3 = vcmask 523264   ;;  %v2468_v11 = vmov 64.0   ;;  %v2096_v28 = vld [vmem:[%s2593_s19 + $0x30] sm:$0xf]  ;;  %v2257_v29 = vld [vmem:[%s2593_s19 + $0x34] sm:$0xf0]  ;;  %s2992_s15 = scalar_lea.vmem %s2961_s1, %s2578_s23  ;;  %s2995_s16 = scalar_lea.vmem %s2966_s6, %s2578_s23 }
  0x2a   : > { %v2645_v7 = vld [vmem:[#allocation2] sm:$0xff]  ;;  %2339 = vrcp.f32 %v2468_v11  ;;  %v2097_v30 = vor.u32 %v2257_v29, %v2096_v28  ;;  %v2255_v32 = vld [vmem:[%s2593_s19 + $0x24] sm:$0xf0]  ;;  %v2080_v34 = vld [vmem:[%s2593_s19 + $0x10] sm:$0xf]  ;;  %s2993_s21 = sld [smem:[#allocation14_spill]]  ;;  %s2996_s14 = scalar_lea.vmem %s2967_s7, %s2578_s23 }
  0x2b   : > { %v708_v8 = vsel %vm707_vm3, %v2645_v7, 0.0  ;;  %v2649_v9 = vld [vmem:[#allocation2 + $0x8] sm:$0xff]  ;;  %v2088_v31 = vld [vmem:[%s2593_s19 + $0x20] sm:$0xf]  ;;  %v2253_v35 = vld [vmem:[%s2593_s19 + $0x14] sm:$0xf0] }
  0x2c   : > { %709 = vadd.xlane.f32.xlu0 %v708_v8  ;;  %v711_v10 = vsel %vm707_vm3, %v2649_v9, 0.0  ;;  %831 = vmatpush.bf16.msra.mxu1 %v2097_v30  ;;  %v2089_v33 = vor.u32 %v2255_v32, %v2088_v31  ;;  %v2081_v36 = vor.u32 %v2253_v35, %v2080_v34  ;;  %v2072_v37 = vld [vmem:[%s2593_s19] sm:$0xf]  ;;  %v2251_v38 = vld [vmem:[%s2593_s19 + $0x4] sm:$0xf0]  ;;  %vm857_vm11 = vcmask 519168  }
  0x2d   : > { %v2073_v40 = vor.u32 %v2251_v38, %v2072_v37  ;;  %v2256_v43 = vld [vmem:[%s2593_s19 + $0x34] sm:$0xf]  ;;  %v2098_v44 = vld [vmem:[%s2593_s19 + $0x38] sm:$0xf0]  ;;  %v2254_v46 = vld [vmem:[%s2593_s19 + $0x24] sm:$0xf] }
  0x2e   : > { %v2101_v45 = vor.u32 %v2256_v43, %v2098_v44  ;;  %v2090_v47 = vld [vmem:[%s2593_s19 + $0x28] sm:$0xf0]  ;;  %v2252_v51 = vld [vmem:[%s2593_s19 + $0x14] sm:$0xf]  ;;  %v2082_v52 = vld [vmem:[%s2593_s19 + $0x18] sm:$0xf0] }
  0x2f   : > { %v2093_v49 = vor.u32 %v2254_v46, %v2090_v47  ;;  %v2085_v56 = vor.u32 %v2252_v51, %v2082_v52  ;;  %v2250_v57 = vld [vmem:[%s2593_s19 + $0x4] sm:$0xf]  ;;  %v2074_v58 = vld [vmem:[%s2593_s19 + $0x8] sm:$0xf0]  ;;  %v2333_v8 = vld [vmem:[%s2992_s15] ss:$0 sm:$0xff] }
  0x30   : > { %v2340_v12 = vpop.eup %2339  ;;  %832 = vmatpush.bf16.msra.mxu1 %v2089_v33  ;;  %v2077_v61 = vor.u32 %v2250_v57, %v2074_v58  ;;  %s2994_s27 = scalar_lea.vmem %s2993_s21, %s2578_s23  ;;  %s2469_s29 = smov 48   ;;  %vm942_vm12 = vcmask 1043456   ;;  %vm870_vm13 = vcmask 130048   ;;  %vm914_vm14 = vcmask 64512  }
  0x31   : > { %v715_v13 = vmul.f32 64.0, %v2340_v12  ;;  %vm719_vm4 = vweird.f32 %v2340_v12  ;;  %s2470_s4 = smov 64   ;;  %s2472_s30 = smov 32   ;;  %vm980_vm15 = vcmask 125952   ;;  %vm1120_vm0 = vcmask 257152  }
  0x32   : > { %s2473_s0 = smov 96   ;;  %s2474_s24 = smov 16   ;;  %vm1254_vm1 = vcmask 388352   ;;  %vm1388_vm2 = vcmask 519552  }
  0x33   : > { %v716_v14 = vsub.f32 1.0, %v715_v13  ;;  %s2475_s19 = smov 80   ;;  %p2239_p5 = scmp.ne.s32.totalorder %s2572_s22, 1 }
  0x34   : > { %712 = vadd.xlane.f32.xlu0 %v711_v10  ;;  %833 = vmatpush.bf16.msra.mxu1 %v2081_v36 }
  0x35   : > { %v717_v15 = vmul.f32 %v2340_v12, %v716_v14  ;;  %v2334_v14 = vld [vmem:[%s2994_s27] ss:$0 sm:$0xff] }
  0x37   : > { %v718_v16 = vadd.f32 %v2340_v12, %v717_v15 }
  0x38   : > { %834 = vmatpush.bf16.msra.mxu1 %v2073_v40 }
  0x39   : > { %v2653_v17 = vsel %vm719_vm4, %v2340_v12, %v718_v16 }
  0x3c   : > { %845 = vmatpush.bf16.msrb.mxu1 %v2101_v45 }
  0x40   : > { %846 = vmatpush.bf16.msrb.mxu1 %v2093_v49 }
  0x44   : > { %847 = vmatpush.bf16.msrb.mxu1 %v2085_v56 }
  0x48   : > { %848 = vmatpush.bf16.msrb.mxu1 %v2077_v61 }
  0x9f   : > { %v710_v18 = vpop.xlane.xlu0 %709 }
  0xa0   : > { %v721_v19 = vmul.f32 %v2653_v17, %v710_v18 }
  0xa2   : > { %v2657_v20 = vsub.f32 %v2645_v7, %v721_v19 }
  0xa4   : > { %v725_v21 = vmul.f32 %v2657_v20, %v2657_v20 }
  0xa6   : > { %v727_v22 = vsel %vm707_vm3, %v725_v21, 0.0 }
  0xa7   : > { %728 = vadd.xlane.f32.xlu1 %v727_v22  ;;  %v713_v23 = vpop.xlane.xlu0 %712 }
  0xa8   : > { %v722_v24 = vmul.f32 %v2653_v17, %v713_v23 }
  0xaa   : > { %v2664_v25 = vsub.f32 %v2649_v9, %v722_v24 }
  0xac   : > { %v726_v26 = vmul.f32 %v2664_v25, %v2664_v25 }
  0xae   : > { %v730_v27 = vsel %vm707_vm3, %v726_v26, 0.0 }
  0xaf   : > { %731 = vadd.xlane.f32.xlu1 %v730_v27 }
 0x11a   : > { %v729_v39 = vpop.xlane.xlu1 %728 }
 0x11b   : > { %v733_v41 = vmul.f32 %v729_v39, %v2653_v17 }
 0x11d   : > { %v735_v42 = vadd.f32 1e-05, %v733_v41 }
 0x11f   : > { %2341 = vrsqrt.f32 %v735_v42  ;;  %vm743_vm6 = vweird.f32 %v735_v42 }
 0x122   : > { %v732_v48 = vpop.xlane.xlu1 %731 }
 0x123   : > { %v734_v50 = vmul.f32 %v732_v48, %v2653_v17 }
 0x125   : > { %v2342_v53 = vpop.eup %2341  ;;  %v736_v54 = vadd.f32 1e-05, %v734_v50 }
 0x126   : > { %v738_v55 = vmul.f32 %v2342_v53, %v735_v42  ;;  %vm744_vm5 = vweird.f32 %v2342_v53 }
 0x127   : > { %2343 = vrsqrt.f32 %v736_v54  ;;  %vm745_vm7 = vmor %vm743_vm6, %vm744_vm5  ;;  %vm753_vm9 = vweird.f32 %v736_v54 }
 0x128   : > { %v739_v59 = vmul.f32 %v2342_v53, %v738_v55 }
 0x12a   : > { %v740_v60 = vmul.f32 0.5, %v739_v59  ;;  %v2734_v59 = vld [vmem:[#allocation3] sm:$0xff] }
 0x12c   : > { %v741_v62 = vsub.f32 1.5, %v740_v60 }
 0x12d   : > { %v2344_v63 = vpop.eup %2343 }
 0x12e   : > { %v742_v0 = vmul.f32 %v2342_v53, %v741_v62  ;;  %v748_v1 = vmul.f32 %v2344_v63, %v736_v54  ;;  %vm754_vm8 = vweird.f32 %v2344_v63 }
 0x12f   : > { %vm755_vm10 = vmor %vm753_vm9, %vm754_vm8 }
 0x130   : > { %v749_v2 = vmul.f32 %v2344_v63, %v748_v1  ;;  %v746_v3 = vsel %vm745_vm7, %v2342_v53, %v742_v0 }
 0x131   : > { %v757_v6 = vmul.f32 %v746_v3, %v2657_v20  ;;  %v778_v20 = vld [vmem:[%s2598_s25] sm:$0x3]  ;;  %s2471_s25 = smov 112  }
 0x132   : > { %v750_v4 = vmul.f32 0.5, %v749_v2  ;;  %v780_v21 = vperm.slane %v778_v20, 0  ;;  %v781_v31 = vperm.slane %v778_v20, 1 }
 0x133   : > { %v762_v13 = vmul.f32 %v2333_v8, %v757_v6 }
 0x134   : > { %v751_v5 = vsub.f32 1.5, %v750_v4 }
 0x135   : > { %v767_v16 = vadd.f32 %v2334_v14, %v762_v13 }
 0x136   : > { %v752_v10 = vmul.f32 %v2344_v63, %v751_v5 }
 0x138   : > { %v756_v11 = vsel %vm755_vm10, %v2344_v63, %v752_v10 }
 0x139   : > { %v758_v12 = vmul.f32 %v756_v11, %v2664_v25 }
 0x13b   : > { %v763_v15 = vmul.f32 %v2333_v8, %v758_v12 }
 0x13d   : > { %v768_v18 = vadd.f32 %v2334_v14, %v763_v15 }
 0x13f   : > { %v769_v19 = vpack.c.bf16 %v768_v18, %v767_v16 }
 0x141   : > { %2102 = vmatmul.msk.bf16.vlgmr.msra.gmra.mxu1 %vm707_vm3, %v769_v19 }
 0x151   : > { %2103 = vmatmul.msk.bf16.vlgmr.msrb.gmra.mxu1 %vm707_vm3, %v769_v19 }
 0x1be   : > { %v836_v22 = vpop.f32.mrf.mxu1 }
 0x1bf   : > { %v837_v23 = vadd.f32 %v836_v22, %v780_v21 }
 0x1c1   : > { %v855_v24 = vpack.c.bf16 %v837_v23, %v837_v23 }
 0x1c3   : > { %858 = vst.msk [vmem:[#allocation5] sm:$0xf] %vm857_vm11, %v855_v24  ;;  %v866_v25 = vunpack.c.l.b16 %v855_v24 }
 0x1c5   : > { %v2703_v26 = vpack.c.b16 %v866_v25, %v866_v25 }
 0x1c6   : > { %v838_v27 = vpop.f32.mrf.mxu1 }
 0x1c7   : > { %v839_v28 = vadd.f32 %v838_v27, %v780_v21  ;;  %991 = vrot.lane.b32.xlu1 %v2703_v26, %s2469_s29  ;;  %868 = vrot.lane.b32.xlu0 %v2703_v26, %s2470_s4 }
 0x1c9   : > { %v856_v29 = vpack.c.bf16 %v839_v28, %v839_v28 }
 0x1ca   : > { %v862_v54 = vld [vmem:[#allocation5] sm:$0xf] }
 0x1cb   : > { %859 = vst.msk [vmem:[#allocation5 + $0x4] sm:$0xf] %vm857_vm11, %v856_v29  ;;  %v891_v30 = vunpack.c.l.b16 %v856_v29 }
 0x1cd   : > { %v892_v32 = vpack.c.b16 %v891_v30, %v891_v30 }
 0x1ce   : > { %v850_v33 = vpop.f32.mrf.mxu1 }
 0x1cf   : > { %v851_v34 = vadd.f32 %v850_v33, %v781_v31  ;;  %893 = vrot.lane.b32.xlu2 %v892_v32, %s2470_s4  ;;  %1017 = vrot.lane.b32.xlu0 %v892_v32, %s2469_s29 }
 0x1d1   : > { %v2725_v47 = vpack.c.bf16 %v851_v34, %v851_v34 }
 0x1d2   : > { %v2288_v35 = vld [vmem:[#allocation5] sm:$0xff]  }
 0x1d3   : > { %v2289_v36 = vunpack.c.l.b16 %v2288_v35  ;;  %v2294_v42 = vunpack.c.h.b16 %v2288_v35  ;;  %v863_v46 = vld [vmem:[#allocation5 + $0x4] sm:$0xf]  ;;  %v944_v52 = vsel %vm942_vm12, %v2725_v47, 0 }
 0x1d5   : > { %v2712_v37 = vpack.c.b16 %v2289_v36, %v2289_v36  ;;  %v1154_v43 = vpack.c.b16 %v2294_v42, %v2294_v42 }
 0x1d6   : > { %v852_v38 = vpop.f32.mrf.mxu1 }
 0x1d7   : > { %v853_v39 = vadd.f32 %v852_v38, %v781_v31  ;;  %989 = vrot.lane.b32.xlu0 %v2712_v37, %s2471_s25 }
 0x1d9   : > { %v2716_v40 = vpack.c.bf16 %v853_v39, %v853_v39 }
 0x1db   : > { %v963_v41 = vsel %vm942_vm12, %v2716_v40, 0 }
 0x1dc   : > { %972 = vmatpush.bf16.msra.mxu0 %v963_v41 }
 0x1df   : > { %1157 = vrot.lane.b32.xlu0 %v892_v32, %s2472_s30 }
 0x1e7   : > { %1155 = vrot.lane.b32.xlu0 %v1154_v43, %s2473_s0 }
 0x1ef   : > { %1291 = vrot.lane.b32.xlu0 %v892_v32, %s2474_s24 }
 0x229   : > { %v894_v44 = vpop.permute.xlu2 %893 }
 0x22a   : > { %v899_v45 = vsel %vm870_vm13, %v894_v44, 0 }
 0x22b   : > { %908 = vmatpush.bf16.xpose.msra.mxu3 %v899_v45 }
 0x232   : > { %2105 = vmatmul.msk.bf16.vlgmr.msra.gmra.mxu3 %vm870_vm13, %v863_v46 }
 0x239   : > { %v992_v48 = vpop.permute.xlu1 %991  ;;  %v869_v49 = vpop.permute.xlu0 %868 }
 0x23a   : > { %v875_v50 = vsel %vm870_vm13, %v869_v49, 0  ;;  %v997_v51 = vsel %vm870_vm13, %v992_v48, 0 }
 0x23b   : > { %884 = vmatpush.bf16.xpose.msra.mxu2 %v875_v50  ;;  %1006 = vmatpush.bf16.xpose.msrb.mxu0 %v997_v51 }
 0x241   : > { %v1018_v53 = vpop.permute.xlu0 %1017 }
 0x242   : > { %v1023_v55 = vsel %vm870_vm13, %v1018_v53, 0  ;;  %2104 = vmatmul.msk.bf16.vlgmr.msra.gmra.mxu2 %vm870_vm13, %v862_v54 }
 0x243   : > { %953 = vmatpush.bf16.msrb.mxu2 %v944_v52  ;;  %1032 = vmatpush.bf16.xpose.msra.mxu1 %v1023_v55 }
 0x249   : > { %v990_v56 = vpop.permute.xlu0 %989 }
 0x251   : > { %v1158_v57 = vpop.permute.xlu0 %1157 }
 0x252   : > { %v1163_v58 = vsel %vm870_vm13, %v1158_v57, 0 }
 0x253   : > { %1172 = vmatpush.bf16.xpose.msrb.mxu1 %v1163_v58 }
 0x259   : > { %v1156_v16 = vpop.permute.xlu0 %1155 }
 0x261   : > { %v1292_v19 = vpop.permute.xlu0 %1291 }
 0x262   : > { %v1297_v21 = vsel %vm870_vm13, %v1292_v19, 0 }
 0x2b5   : > { %v910_v60 = vpop.f32.mrf.mxu3 }
 0x2b6   : > { %v911_v61 = vadd.f32 %v910_v60, %v2734_v59  ;;  %v1063_v60 = vunpack.c.l.b16 %v2725_v47 }
 0x2b8   : > { %v918_v62 = vsel %vm914_vm14, %v911_v61, -inf }
 0x2b9   : > { %919 = vmax.xlane.f32.xlu2 %v918_v62  ;;  %v1087_v62 = vunpack.c.l.b16 %v2716_v40 }
 0x2bd   : > { %v912_v63 = vpop.f32.mrf.mxu3 }
 0x2be   : > { %v2779_v63 = vpack.c.b16 %v1087_v62, %v1087_v62 }
 0x2c5   : > { %v886_v0 = vpop.f32.mrf.mxu2 }
 0x2c6   : > { %v887_v1 = vadd.f32 %v886_v0, %v2734_v59 }
 0x2c8   : > { %v915_v2 = vsel %vm914_vm14, %v887_v1, -inf }
 0x2c9   : > { %916 = vmax.xlane.f32.xlu0 %v915_v2 }
 0x2cd   : > { %v888_v3 = vpop.f32.mrf.mxu2 }
 0x2d1   : > { %1131 = vrot.lane.b32.xlu2 %v2703_v26, %s2472_s30 }
 0x2d9   : > { %1289 = vrot.lane.b32.xlu2 %v1154_v43, %s2475_s19 }
 0x32c   : > { %v920_v4 = vpop.xlane.xlu2 %919 }
 0x32d   : > { %v922_v5 = vsub.f32 %v911_v61, %v920_v4  ;;  %v2774_v61 = vpack.c.b16 %v1063_v60, %v1063_v60 }
 0x32f   : > { %v925_v6 = vmul.f32 1.442695, %v922_v5 }
 0x331   : > { %2345 = vpow2.f32 %v925_v6 }
 0x334   : > { %v1132_v14 = vpop.permute.xlu2 %1131 }
 0x335   : > { %v1137_v18 = vsel %vm870_vm13, %v1132_v14, 0 }
 0x337   : > { %v2346_v8 = vpop.eup %2345 }
 0x338   : > { %v930_v10 = vsel %vm914_vm14, %v2346_v8, 0.0 }
 0x339   : > { %931 = vadd.xlane.f32.xlu1 %v930_v10 }
 0x33c   : > { %v1290_v25 = vpop.permute.xlu2 %1289  ;;  %v917_v36 = vpop.xlane.xlu0 %916 }
 0x33d   : > { %v921_v38 = vsub.f32 %v887_v1, %v917_v36 }
 0x33f   : > { %v923_v41 = vmul.f32 1.442695, %v921_v38 }
 0x352   : > { %1015 = vrot.lane.b32.xlu1 %v1154_v43, %s2471_s25 }
 0x35a   : > { %1129 = vrot.lane.b32.xlu1 %v2712_v37, %s2473_s0 }
 0x362   : > { %1265 = vrot.lane.b32.xlu1 %v2703_v26, %s2474_s24 }
 0x36a   : > { %1263 = vrot.lane.b32.xlu1 %v2712_v37, %s2475_s19 }
 0x3ac   : > { %v932_v11 = vpop.xlane.xlu1 %931 }
 0x3ad   : > { %2347 = vrcp.f32 %v932_v11 }
 0x3ae   : > { %2349 = vpow2.f32 %v923_v41 }
 0x3b3   : > { %v2348_v12 = vpop.eup %2347 }
 0x3b4   : > { %v936_v13 = vmul.f32 %v2348_v12, %v2346_v8  ;;  %v2350_v46 = vpop.eup %2349 }
 0x3b5   : > { %v927_v50 = vsel %vm914_vm14, %v2350_v46, 0.0 }
 0x3b6   : > { %v938_v15 = vpack.c.bf16 %v936_v13, %v936_v13 }
 0x3b8   : > { %2107 = vmatmul.msk.bf16.vlgmr.msra.gmra.mxu0 %vm914_vm14, %v938_v15 }
 0x3b9   : > { %1146 = vmatpush.bf16.xpose.msra.mxu0 %v1137_v18 }
 0x3c4   : > { %v1016_v20 = vpop.permute.xlu1 %1015 }
 0x3c5   : > { %2109 = vmatmul.msk.bf16.vlgmr.msra.gmra.mxu1 %vm870_vm13, %v1016_v20 }
 0x3c6   : > { %1306 = vmatpush.bf16.xpose.msra.mxu1 %v1297_v21 }
 0x3c8   : > { %2108 = vmatmul.msk.bf16.vlgmr.msrb.gmra.mxu0 %vm870_vm13, %v990_v56 }
 0x3cc   : > { %v1130_v22 = vpop.permute.xlu1 %1129 }
 0x3d4   : > { %v1266_v23 = vpop.permute.xlu1 %1265 }
 0x3d5   : > { %v1271_v24 = vsel %vm870_vm13, %v1266_v23, 0  ;;  %2113 = vmatmul.msk.bf16.vlgmr.msrb.gmra.mxu1 %vm870_vm13, %v1156_v16 }
 0x3d6   : > { %1280 = vmatpush.bf16.xpose.msrb.mxu0 %v1271_v24 }
 0x3d8   : > { %2112 = vmatmul.msk.bf16.vlgmr.msra.gmra.mxu0 %vm870_vm13, %v1130_v22 }
 0x3dc   : > { %v1264_v26 = vpop.permute.xlu1 %1263 }
 0x3e5   : > { %2117 = vmatmul.msk.bf16.vlgmr.msra.gmra.mxu1 %vm870_vm13, %v1290_v25 }
 0x3e8   : > { %2116 = vmatmul.msk.bf16.vlgmr.msrb.gmra.mxu0 %vm870_vm13, %v1264_v26 }
 0x435   : > { %v974_v27 = vpop.f32.mrf.mxu0 }
 0x436   : > { %v979_v28 = vpack.c.bf16 %v974_v27, %v974_v27 }
 0x438   : > { %982 = vst.msk [vmem:[#allocation4 + $0x4] sm:$0xf] %vm980_vm15, %v979_v28 }
 0x43d   : > { %v976_v29 = vpop.f32.mrf.mxu0 }
 0x442   : > { %v1034_v30 = vpop.f32.mrf.mxu1 }
 0x443   : > { %v1035_v31 = vadd.f32 %v1034_v30, %v2734_v59 }
 0x445   : > { %v1008_v32 = vpop.f32.mrf.mxu0  ;;  %v1041_v33 = vsel %vm914_vm14, %v1035_v31, -inf }
 0x446   : > { %v1009_v34 = vadd.f32 %v1008_v32, %v2734_v59  ;;  %1042 = vmax.xlane.f32.xlu2 %v1041_v33 }
 0x448   : > { %v1038_v35 = vsel %vm914_vm14, %v1009_v34, -inf }
 0x449   : > { %1039 = vmax.xlane.f32.xlu1 %v1038_v35 }
 0x44a   : > { %v1036_v37 = vpop.f32.mrf.mxu1 }
 0x44d   : > { %v1010_v39 = vpop.f32.mrf.mxu0 }
 0x452   : > { %v1174_v42 = vpop.f32.mrf.mxu1 }
 0x453   : > { %v1175_v43 = vadd.f32 %v1174_v42, %v2734_v59 }
 0x455   : > { %v1148_v44 = vpop.f32.mrf.mxu0  ;;  %v1181_v45 = vsel %vm914_vm14, %v1175_v43, -inf }
 0x456   : > { %1182 = vmax.xlane.f32.xlu2 %v1181_v45  ;;  %v1149_v10 = vadd.f32 %v1148_v44, %v2734_v59 }
 0x458   : > { %v1178_v14 = vsel %vm914_vm14, %v1149_v10, -inf }
 0x45a   : > { %v1176_v48 = vpop.f32.mrf.mxu1 }
 0x45d   : > { %v1150_v49 = vpop.f32.mrf.mxu0 }
 0x45e   : > { %928 = vadd.xlane.f32.xlu2 %v927_v50 }
 0x462   : > { %v1308_v51 = vpop.f32.mrf.mxu1 }
 0x463   : > { %v1309_v52 = vadd.f32 %v1308_v51, %v2734_v59 }
 0x465   : > { %v1282_v53 = vpop.f32.mrf.mxu0  ;;  %v1315_v54 = vsel %vm914_vm14, %v1309_v52, -inf }
 0x466   : > { %v1283_v55 = vadd.f32 %v1282_v53, %v2734_v59  ;;  %1316 = vmax.xlane.f32.xlu0 %v1315_v54 }
 0x468   : > { %v1312_v56 = vsel %vm914_vm14, %v1283_v55, -inf }
 0x469   : > { %1313 = vmax.xlane.f32.xlu1 %v1312_v56 }
 0x46a   : > { %v1310_v57 = vpop.f32.mrf.mxu1 }
 0x46d   : > { %v1284_v58 = vpop.f32.mrf.mxu0 }
 0x476   : > { %1065 = vrot.lane.b32.xlu2 %v2774_v61, %s2471_s25 }
 0x47e   : > { %1223 = vrot.lane.b32.xlu2 %v2779_v63, %s2473_s0 }
 0x4b9   : > { %v1043_v0 = vpop.xlane.xlu2 %1042 }
 0x4ba   : > { %v1045_v1 = vsub.f32 %v1035_v31, %v1043_v0 }
 0x4bc   : > { %v1048_v2 = vmul.f32 1.442695, %v1045_v1  ;;  %v1040_v3 = vpop.xlane.xlu1 %1039 }
 0x4bd   : > { %v1044_v4 = vsub.f32 %v1009_v34, %v1040_v3 }
 0x4be   : > { %2351 = vpow2.f32 %v1048_v2 }
 0x4bf   : > { %v1046_v5 = vmul.f32 1.442695, %v1044_v4 }
 0x4c1   : > { %2353 = vpow2.f32 %v1046_v5 }
 0x4c4   : > { %v2352_v47 = vpop.eup %2351 }
 0x4c5   : > { %v1053_v6 = vsel %vm914_vm14, %v2352_v47, 0.0 }
 0x4c6   : > { %1054 = vadd.xlane.f32.xlu0 %v1053_v6 }
 0x4c7   : > { %v2354_v8 = vpop.eup %2353 }
 0x4c8   : > { %v1050_v40 = vsel %vm914_vm14, %v2354_v8, 0.0 }
 0x4c9   : > { %1051 = vadd.xlane.f32.xlu1 %v1050_v40  ;;  %v1183_v11 = vpop.xlane.xlu2 %1182 }
 0x4ca   : > { %v1185_v12 = vsub.f32 %v1175_v43, %v1183_v11 }
 0x4cc   : > { %v1188_v13 = vmul.f32 1.442695, %v1185_v12 }
 0x4ce   : > { %2355 = vpow2.f32 %v1188_v13  ;;  %1179 = vmax.xlane.f32.xlu0 %v1178_v14 }
 0x4d1   : > { %v929_v15 = vpop.xlane.xlu2 %928 }
 0x4d2   : > { %2357 = vrcp.f32 %v929_v15 }
 0x4d4   : > { %v2356_v16 = vpop.eup %2355 }
 0x4d5   : > { %v1193_v18 = vsel %vm914_vm14, %v2356_v16, 0.0 }
 0x4d6   : > { %1194 = vadd.xlane.f32.xlu0 %v1193_v18 }
 0x4d8   : > { %v2358_v19 = vpop.eup %2357 }
 0x4d9   : > { %v935_v20 = vmul.f32 %v2358_v19, %v2350_v46  ;;  %v1066_v21 = vpop.permute.xlu2 %1065  ;;  %v1317_v22 = vpop.xlane.xlu0 %1316 }
 0x4da   : > { %v1071_v59 = vsel %vm942_vm12, %v1066_v21, 0  ;;  %v1319_v23 = vsub.f32 %v1309_v52, %v1317_v22 }
 0x4db   : > { %1080 = vmatpush.bf16.msra.mxu2 %v1071_v59  ;;  %v937_v24 = vpack.c.bf16 %v935_v20, %v935_v20 }
 0x4dc   : > { %v1322_v25 = vmul.f32 1.442695, %v1319_v23  ;;  %v1314_v28 = vpop.xlane.xlu1 %1313 }
 0x4dd   : > { %2106 = vmatmul.msk.bf16.vlgmr.msrb.gmra.mxu2 %vm914_vm14, %v937_v24  ;;  %v1318_v29 = vsub.f32 %v1283_v55, %v1314_v28 }
 0x4de   : > { %2359 = vpow2.f32 %v1322_v25 }
 0x4df   : > { %v1320_v30 = vmul.f32 1.442695, %v1318_v29 }
 0x4e1   : > { %2361 = vpow2.f32 %v1320_v30  ;;  %v1224_v45 = vpop.permute.xlu2 %1223 }
 0x4e2   : > { %1089 = vrot.lane.b32.xlu1 %v2779_v63, %s2471_s25  ;;  %v1229_v51 = vsel %vm942_vm12, %v1224_v45, 0 }
 0x4e4   : > { %v2792_v26 = vpop.eup %2359 }
 0x4e5   : > { %v1327_v27 = vsel %vm914_vm14, %v2792_v26, 0.0 }
 0x4e6   : > { %1328 = vadd.xlane.f32.xlu2 %v1327_v27 }
 0x4e7   : > { %v2362_v31 = vpop.eup %2361 }
 0x4e8   : > { %v1324_v32 = vsel %vm914_vm14, %v2362_v31, 0.0 }
 0x4ea   : > { %1202 = vrot.lane.b32.xlu0 %v2774_v61, %s2473_s0 }
 0x50c   : > { %1325 = vadd.xlane.f32.xlu1 %v1324_v32 }
 0x539   : > { %v1055_v33 = vpop.xlane.xlu0 %1054 }
 0x53c   : > { %v1052_v34 = vpop.xlane.xlu1 %1051 }
 0x53d   : > { %2363 = vrcp.f32 %v1052_v34 }
 0x541   : > { %v1180_v35 = vpop.xlane.xlu0 %1179 }
 0x542   : > { %v1184_v36 = vsub.f32 %v1149_v10, %v1180_v35  ;;  %v2262_v35 = vld [vmem:[%s2608_s28 + $0x18] sm:$0xff] }
 0x543   : > { %v2364_v37 = vpop.eup %2363  ;;  %1441 = vmatpush.bf16.msra.mxu0 %v2262_v35 }
 0x544   : > { %v1058_v38 = vmul.f32 %v2364_v37, %v2354_v8  ;;  %v1186_v39 = vmul.f32 1.442695, %v1184_v36  ;;  %v2261_v36 = vld [vmem:[%s2608_s28 + $0x10] sm:$0xff]  ;;  %v2260_v37 = vld [vmem:[%s2608_s28 + $0x8] sm:$0xff] }
 0x546   : > { %v1060_v41 = vpack.c.bf16 %v1058_v38, %v1058_v38  ;;  %2365 = vpow2.f32 %v1186_v39  ;;  %v2259_v38 = vld [vmem:[%s2608_s28] sm:$0xff] }
 0x547   : > { %2367 = vrcp.f32 %v1055_v33  ;;  %1442 = vmatpush.bf16.msra.mxu0 %v2261_v36 }
 0x548   : > { %2110 = vmatmul.msk.bf16.vlgmr.msra.gmra.mxu2 %vm914_vm14, %v1060_v41 }
 0x549   : > { %v1195_v48 = vpop.xlane.xlu0 %1194 }
 0x54a   : > { %2369 = vrcp.f32 %v1195_v48 }
 0x54b   : > { %1443 = vmatpush.bf16.msra.mxu0 %v2260_v37 }
 0x54c   : > { %v2366_v42 = vpop.eup %2365 }
 0x54d   : > { %v1190_v43 = vsel %vm914_vm14, %v2366_v42, 0.0  ;;  %v2368_v44 = vpop.eup %2367 }
 0x54e   : > { %1191 = vadd.xlane.f32.xlu0 %v1190_v43  ;;  %v1059_v46 = vmul.f32 %v2368_v44, %v2352_v47  ;;  %v2335_v44 = vld [vmem:[%s2995_s16] ss:$0 sm:$0xff] }
 0x54f   : > { %1444 = vmatpush.bf16.msra.mxu0 %v2259_v38 }
 0x550   : > { %v1061_v52 = vpack.c.bf16 %v1059_v46, %v1059_v46  ;;  %v2370_v55 = vpop.eup %2369 }
 0x551   : > { %v1199_v58 = vmul.f32 %v2370_v55, %v2356_v16 }
 0x553   : > { %v1201_v60 = vpack.c.bf16 %v1199_v58, %v1199_v58 }
 0x554   : > { %v1090_v49 = vpop.permute.xlu1 %1089 }
 0x555   : > { %v1095_v50 = vsel %vm942_vm12, %v1090_v49, 0 }
 0x556   : > { %1104 = vmatpush.bf16.msrb.mxu3 %v1095_v50 }
 0x559   : > { %2111 = vmatmul.msk.bf16.vlgmr.msrb.gmra.mxu3 %vm914_vm14, %v1061_v52 }
 0x55a   : > { %1238 = vmatpush.bf16.msra.mxu3 %v1229_v51 }
 0x55c   : > { %v1203_v53 = vpop.permute.xlu0 %1202 }
 0x55d   : > { %v1208_v54 = vsel %vm942_vm12, %v1203_v53, 0 }
 0x55e   : > { %1217 = vmatpush.bf16.msrb.mxu2 %v1208_v54 }
 0x560   : > { %v955_v56 = vpop.f32.mrf.mxu2 }
 0x561   : > { %v978_v57 = vpack.c.bf16 %v955_v56, %v955_v56 }
 0x562   : > { %1336 = vrot.lane.b32.xlu0 %v2774_v61, %s2475_s19  ;;  %v1329_v61 = vpop.xlane.xlu2 %1328 }
 0x563   : > { %981 = vst.msk [vmem:[#allocation4] sm:$0xf] %vm980_vm15, %v978_v57 }
 0x568   : > { %v957_v62 = vpop.f32.mrf.mxu2 }
 0x569   : > { %2115 = vmatmul.msk.bf16.vlgmr.msra.gmra.mxu3 %vm914_vm14, %v1201_v60 }
 0x56a   : > { %1357 = vrot.lane.b32.xlu0 %v2779_v63, %s2475_s19 }
 0x57f   : > { %v1326_v3 = vpop.xlane.xlu1 %1325 }
 0x5c1   : > { %v1192_v0 = vpop.xlane.xlu0 %1191 }
 0x5c2   : > { %2371 = vrcp.f32 %v1192_v0 }
 0x5c3   : > { %2373 = vrcp.f32 %v1326_v3  ;;  %v2269_v3 = vld [vmem:[%s2621_s2 + $0x34] sm:$0xf] }
 0x5c4   : > { %2375 = vrcp.f32 %v1329_v61 }
 0x5c8   : > { %v2372_v1 = vpop.eup %2371 }
 0x5c9   : > { %v1198_v2 = vmul.f32 %v2372_v1, %v2366_v42  ;;  %v2374_v6 = vpop.eup %2373  ;;  %v2167_v1 = vld [vmem:[%s2621_s2 + $0x30] sm:$0xf] }
 0x5ca   : > { %v1332_v10 = vmul.f32 %v2374_v6, %v2362_v31  ;;  %v2376_v63 = vpop.eup %2375  ;;  %v2268_v6 = vld [vmem:[%s2621_s2 + $0x24] sm:$0xf0] }
 0x5cb   : > { %v1200_v4 = vpack.c.bf16 %v1198_v2, %v1198_v2  ;;  %v1082_v5 = vpop.f32.mrf.mxu2  ;;  %v1333_v11 = vmul.f32 %v2376_v63, %v2792_v26  ;;  %v2270_v2 = vld [vmem:[%s2621_s2 + $0x34] sm:$0xf0] }
 0x5cc   : > { %v1334_v12 = vpack.c.bf16 %v1332_v10, %v1332_v10  ;;  %v1110_v20 = vpack.c.bf16 %v1082_v5, %v1082_v5  ;;  %v2169_v5 = vld [vmem:[%s2621_s2 + $0x38] sm:$0xf0]  ;;  %v2161_v10 = vld [vmem:[%s2621_s2 + $0x28] sm:$0xf0] }
 0x5cd   : > { %2114 = vmatmul.msk.bf16.vlgmr.msrb.gmra.mxu2 %vm914_vm14, %v1200_v4  ;;  %v1335_v18 = vpack.c.bf16 %v1333_v11, %v1333_v11  ;;  %v2168_v4 = vor.u32 %v2270_v2, %v2167_v1  ;;  %v2172_v61 = vor.u32 %v2269_v3, %v2169_v5  ;;  %v2151_v11 = vld [vmem:[%s2621_s2 + $0x10] sm:$0xf]  ;;  %v2283_v1 = vld [vmem:[%s2632_s13 + $0x60] sm:$0xff]  ;;  %v2282_v3 = vld [vmem:[%s2632_s13 + $0x58] sm:$0xff] }
 0x5ce   : > { %v2273_v2 = vld [vmem:[%s2632_s13 + $0x10] sm:$0xff]  ;;  %v1518_v5 = vld [vmem:[%s2626_s26] sm:$0x3] }
 0x5cf   : > { %1571 = vmatpush.bf16.msrb.mxu1 %v2168_v4  ;;  %v2272_v4 = vld [vmem:[%s2632_s13 + $0x8] sm:$0xff] }
 0x5d3   : > { %v1084_v47 = vpop.f32.mrf.mxu2 }
 0x5d4   : > { %v1337_v8 = vpop.permute.xlu0 %1336  ;;  %v2159_v47 = vld [vmem:[%s2621_s2 + $0x20] sm:$0xf] }
 0x5d5   : > { %v1342_v40 = vsel %vm942_vm12, %v1337_v8, 0  ;;  %v2267_v8 = vld [vmem:[%s2621_s2 + $0x24] sm:$0xf] }
 0x5d6   : > { %1351 = vmatpush.bf16.msra.mxu2 %v1342_v40  ;;  %v2160_v40 = vor.u32 %v2268_v6, %v2159_v47  ;;  %v2164_v63 = vor.u32 %v2267_v8, %v2161_v10  ;;  %v2271_v47 = vld [vmem:[%s2632_s13] sm:$0xff]  ;;  %v1520_v6 = vperm.slane %v1518_v5, 0  ;;  %v2280_v8 = vld [vmem:[%s2632_s13 + $0x48] sm:$0xff] }
 0x5d8   : > { %1572 = vmatpush.bf16.msrb.mxu1 %v2160_v40 }
 0x5da   : > { %1585 = vmatpush.bf16.msrb.mxu2 %v2172_v61  ;;  %v2281_v61 = vld [vmem:[%s2632_s13 + $0x50] sm:$0xff] }
 0x5dc   : > { %v1106_v13 = vpop.f32.mrf.mxu3  ;;  %v1358_v14 = vpop.permute.xlu0 %1357 }
 0x5dd   : > { %v1111_v15 = vpack.c.bf16 %v1106_v13, %v1106_v13  ;;  %v1363_v16 = vsel %vm942_vm12, %v1358_v14, 0  ;;  %2118 = vmatmul.msk.bf16.vlgmr.msra.gmra.mxu2 %vm914_vm14, %v1334_v12  ;;  %v2266_v12 = vld [vmem:[%s2621_s2 + $0x14] sm:$0xf0]  ;;  %v2265_v13 = vld [vmem:[%s2621_s2 + $0x14] sm:$0xf] }
 0x5de   : > { %1372 = vmatpush.bf16.msrb.mxu3 %v1363_v16  ;;  %1586 = vmatpush.bf16.msrb.mxu2 %v2164_v63  ;;  %v2152_v14 = vor.u32 %v2266_v12, %v2151_v11  ;;  %v2279_v63 = vld [vmem:[%s2632_s13 + $0x40] sm:$0xff]  ;;  %v1521_v12 = vperm.slane %v1518_v5, 1 }
 0x5df   : > { %1116 = vrot.lane.b32.xlu0 %v1111_v15, %s2474_s24  ;;  %v2153_v15 = vld [vmem:[%s2621_s2 + $0x18] sm:$0xf0] }
 0x5e0   : > { %1573 = vmatpush.bf16.msrb.mxu1 %v2152_v14 }
 0x5e1   : > { %2119 = vmatmul.msk.bf16.vlgmr.msrb.gmra.mxu3 %vm914_vm14, %v1335_v18  ;;  %v2156_v18 = vor.u32 %v2265_v13, %v2153_v15 }
 0x5e3   : > { %1587 = vmatpush.bf16.msrb.mxu2 %v2156_v18 }
 0x5e4   : > { %v1108_v19 = vpop.f32.mrf.mxu3 }
 0x5e7   : > { %1114 = vrot.lane.b32.xlu0 %v1110_v20, %s2474_s24  ;;  %v2143_v20 = vld [vmem:[%s2621_s2] sm:$0xf] }
 0x5ec   : > { %v1240_v21 = vpop.f32.mrf.mxu3 }
 0x5ed   : > { %v1245_v22 = vpack.c.bf16 %v1240_v21, %v1240_v21  ;;  %v2264_v21 = vld [vmem:[%s2621_s2 + $0x4] sm:$0xf0] }
 0x5ef   : > { %1250 = vrot.lane.b32.xlu0 %v1245_v22, %s2472_s30  ;;  %v2263_v22 = vld [vmem:[%s2621_s2 + $0x4] sm:$0xf] }
 0x5f4   : > { %v1242_v59 = vpop.f32.mrf.mxu3 }
 0x650   : > { %v1219_v23 = vpop.f32.mrf.mxu2 }
 0x651   : > { %v1244_v24 = vpack.c.bf16 %v1219_v23, %v1219_v23  ;;  %v1117_v25 = vpop.permute.xlu0 %1116  ;;  %v2144_v23 = vor.u32 %v2264_v21, %v2143_v20 }
 0x652   : > { %1122 = vst.msk [vmem:[#allocation4 + $0x4] sm:$0xf] %vm1120_vm0, %v1117_v25 }
 0x653   : > { %1248 = vrot.lane.b32.xlu1 %v1244_v24, %s2472_s30  ;;  %v2145_v24 = vld [vmem:[%s2621_s2 + $0x8] sm:$0xf0]  ;;  %1574 = vmatpush.bf16.msrb.mxu1 %v2144_v23  ;;  %s2998_s30 = sld [smem:[#allocation18_spill]] (!%p2239_p5) }
 0x654   : > { %v2148_v25 = vor.u32 %v2263_v22, %v2145_v24 }
 0x656   : > { %1588 = vmatpush.bf16.msrb.mxu2 %v2148_v25 }
 0x658   : > { %v1221_v26 = vpop.f32.mrf.mxu2 }
 0x659   : > { %v1115_v27 = vpop.permute.xlu0 %1114 }
 0x65a   : > { %1121 = vst.msk [vmem:[#allocation4] sm:$0xf] %vm1120_vm0, %v1115_v27 }
 0x660   : > { %v1353_v28 = vpop.f32.mrf.mxu2 }
 0x661   : > { %v1378_v29 = vpack.c.bf16 %v1353_v28, %v1353_v28  ;;  %v1251_v30 = vpop.permute.xlu0 %1250 }
 0x662   : > { %1256 = vst.msk [vmem:[#allocation4 + $0x4] sm:$0xf] %vm1254_vm1, %v1251_v30 }
 0x663   : > { %1382 = vrot.lane.b32.xlu2 %v1378_v29, %s2469_s29 }
 0x664   : > { %v1374_v31 = vpop.f32.mrf.mxu3 }
 0x665   : > { %v1379_v32 = vpack.c.bf16 %v1374_v31, %v1374_v31 }
 0x667   : > { %1384 = vrot.lane.b32.xlu0 %v1379_v32, %s2469_s29 }
 0x668   : > { %v1355_v33 = vpop.f32.mrf.mxu2 }
 0x66c   : > { %v1376_v34 = vpop.f32.mrf.mxu3 }
 0x6bd   : > { %v1383_v41 = vpop.permute.xlu2 %1382 }
 0x6c5   : > { %v1249_v39 = vpop.permute.xlu1 %1248 }
 0x6c6   : > { %1255 = vst.msk [vmem:[#allocation4] sm:$0xf] %vm1254_vm1, %v1249_v39 }
 0x6c7   : > { %1389 = vst.msk [vmem:[#allocation4] sm:$0xf] %vm1388_vm2, %v1383_v41 }
 0x6d9   : > { %v1385_v42 = vpop.permute.xlu0 %1384 }
 0x6da   : > { %1390 = vst.msk [vmem:[#allocation4 + $0x4] sm:$0xf] %vm1388_vm2, %v1385_v42  ;;  %v2336_v42 = vld [vmem:[%s2996_s14] ss:$0 sm:$0xff] }
 0x6e1   : > { %v2258_v43 = vld [vmem:[#allocation4] sm:$0xff] }
 0x6e2   : > { %2140 = vmatmul.msk.bf16.vlgmr.msra.gmra.mxu0 %vm707_vm3, %v2258_v43 }
 0x75f   : > { %v1446_v45 = vpop.f32.mrf.mxu0 }
 0x760   : > { %v1447_v46 = vadd.f32 %v2335_v44, %v1446_v45 }
 0x762   : > { %v2836_v48 = vadd.f32 %v1447_v46, %v2645_v7  ;;  %v2337_v46 = vld [vmem:[%s667_s20] ss:$0 sm:$0xff] }
 0x764   : > { %v1455_v49 = vsel %vm707_vm3, %v2836_v48, 0.0 }
 0x765   : > { %1456 = vadd.xlane.f32.xlu0 %v1455_v49 }
 0x767   : > { %v1448_v50 = vpop.f32.mrf.mxu0 }
 0x768   : > { %v1449_v51 = vadd.f32 %v2335_v44, %v1448_v50 }
 0x76a   : > { %v2841_v52 = vadd.f32 %v1449_v51, %v2649_v9 }
 0x76c   : > { %v1458_v53 = vsel %vm707_vm3, %v2841_v52, 0.0 }
 0x76d   : > { %1459 = vadd.xlane.f32.xlu1 %v1458_v53 }
 0x7d8   : > { %v1457_v54 = vpop.xlane.xlu0 %1456 }
 0x7d9   : > { %v1461_v7 = vmul.f32 %v1457_v54, %v2653_v17 }
 0x7db   : > { %v2847_v55 = vsub.f32 %v2836_v48, %v1461_v7 }
 0x7dd   : > { %v1465_v56 = vmul.f32 %v2847_v55, %v2847_v55 }
 0x7df   : > { %v1467_v57 = vsel %vm707_vm3, %v1465_v56, 0.0  ;;  %v2277_v56 = vld [vmem:[%s2632_s13 + $0x30] sm:$0xff] }
 0x7e0   : > { %v1460_v9 = vpop.xlane.xlu1 %1459  ;;  %1468 = vadd.xlane.f32.xlu2 %v1467_v57  ;;  %v2286_v57 = vld [vmem:[%s2632_s13 + $0x78] sm:$0xff] }
 0x7e1   : > { %v1462_v58 = vmul.f32 %v1460_v9, %v2653_v17  ;;  %1779 = vmatpush.bf16.msrb.mxu0 %v2286_v57  ;;  %v2276_v9 = vld [vmem:[%s2632_s13 + $0x28] sm:$0xff] }
 0x7e3   : > { %v2854_v60 = vsub.f32 %v2841_v52, %v1462_v58  ;;  %v2285_v58 = vld [vmem:[%s2632_s13 + $0x70] sm:$0xff] }
 0x7e5   : > { %v1466_v62 = vmul.f32 %v2854_v60, %v2854_v60  ;;  %1780 = vmatpush.bf16.msrb.mxu0 %v2285_v58  ;;  %v2338_v58 = vld [vmem:[%s684_s3] ss:$0 sm:$0xff]  ;;  %s2997_s3 = sld [smem:[#allocation17_spill]] (!%p2239_p5) }
 0x7e7   : > { %v1470_v0 = vsel %vm707_vm3, %v1466_v62, 0.0  ;;  %v2284_v62 = vld [vmem:[%s2632_s13 + $0x68] sm:$0xff] }
 0x7e8   : > { %1471 = vadd.xlane.f32.xlu0 %v1470_v0  ;;  %v2274_v0 = vld [vmem:[%s2632_s13 + $0x18] sm:$0xff] }
 0x7e9   : > { %1781 = vmatpush.bf16.msrb.mxu0 %v2284_v62 }
 0x7ed   : > { %1782 = vmatpush.bf16.msrb.mxu0 %v2283_v1 }
 0x7f1   : > { %1783 = vmatpush.bf16.msrb.mxu0 %v2282_v3 }
 0x7f5   : > { %1784 = vmatpush.bf16.msrb.mxu0 %v2281_v61 }
 0x7f9   : > { %1785 = vmatpush.bf16.msrb.mxu0 %v2280_v8 }
 0x7fd   : > { %1786 = vmatpush.bf16.msrb.mxu0 %v2279_v63 }
 0x853   : > { %v1469_v16 = vpop.xlane.xlu2 %1468 }
 0x854   : > { %v1473_v19 = vmul.f32 %v1469_v16, %v2653_v17 }
 0x856   : > { %v1475_v59 = vadd.f32 1e-05, %v1473_v19 }
 0x858   : > { %2377 = vrsqrt.f32 %v1475_v59  ;;  %vm1483_vm5 = vweird.f32 %v1475_v59 }
 0x85b   : > { %v1472_v26 = vpop.xlane.xlu0 %1471 }
 0x85c   : > { %v1474_v27 = vmul.f32 %v1472_v26, %v2653_v17 }
 0x85e   : > { %v2378_v28 = vpop.eup %2377  ;;  %v1476_v29 = vadd.f32 1e-05, %v1474_v27 }
 0x85f   : > { %v1478_v30 = vmul.f32 %v2378_v28, %v1475_v59  ;;  %vm1484_vm4 = vweird.f32 %v2378_v28 }
 0x860   : > { %2379 = vrsqrt.f32 %v1476_v29  ;;  %vm1485_vm6 = vmor %vm1483_vm5, %vm1484_vm4  ;;  %vm1493_vm8 = vweird.f32 %v1476_v29 }
 0x861   : > { %v1479_v31 = vmul.f32 %v2378_v28, %v1478_v30 }
 0x863   : > { %v1480_v32 = vmul.f32 0.5, %v1479_v31 }
 0x865   : > { %v1481_v33 = vsub.f32 1.5, %v1480_v32 }
 0x866   : > { %v2380_v34 = vpop.eup %2379 }
 0x867   : > { %v1482_v35 = vmul.f32 %v2378_v28, %v1481_v33  ;;  %v1488_v36 = vmul.f32 %v2380_v34, %v1476_v29  ;;  %vm1494_vm7 = vweird.f32 %v2380_v34 }
 0x868   : > { %vm1495_vm9 = vmor %vm1493_vm8, %vm1494_vm7 }
 0x869   : > { %v1489_v37 = vmul.f32 %v2380_v34, %v1488_v36  ;;  %v1486_v38 = vsel %vm1485_vm6, %v2378_v28, %v1482_v35 }
 0x86a   : > { %v1497_v43 = vmul.f32 %v1486_v38, %v2847_v55  ;;  %v2278_v55 = vld [vmem:[%s2632_s13 + $0x38] sm:$0xff] }
 0x86b   : > { %v1490_v39 = vmul.f32 0.5, %v1489_v37  ;;  %1765 = vmatpush.bf16.msra.mxu3 %v2278_v55 }
 0x86c   : > { %v1502_v49 = vmul.f32 %v2336_v42, %v1497_v43 }
 0x86d   : > { %v1491_v41 = vsub.f32 1.5, %v1490_v39 }
 0x86e   : > { %v1507_v53 = vadd.f32 %v2337_v46, %v1502_v49 }
 0x86f   : > { %v1492_v44 = vmul.f32 %v2380_v34, %v1491_v41  ;;  %1766 = vmatpush.bf16.msra.mxu3 %v2277_v56 }
 0x871   : > { %v1496_v45 = vsel %vm1495_vm9, %v2380_v34, %v1492_v44 }
 0x872   : > { %v1498_v50 = vmul.f32 %v1496_v45, %v2854_v60  ;;  %v2275_v60 = vld [vmem:[%s2632_s13 + $0x20] sm:$0xff] }
 0x873   : > { %1767 = vmatpush.bf16.msra.mxu3 %v2276_v9 }
 0x874   : > { %v1503_v51 = vmul.f32 %v2336_v42, %v1498_v50 }
 0x876   : > { %v1508_v54 = vadd.f32 %v2337_v46, %v1503_v51 }
 0x877   : > { %1768 = vmatpush.bf16.msra.mxu3 %v2275_v60 }
 0x878   : > { %v1509_v7 = vpack.c.bf16 %v1508_v54, %v1507_v53 }
 0x87a   : > { %2173 = vmatmul.msk.bf16.vlgmr.msrb.gmra.mxu1 %vm707_vm3, %v1509_v7  ;;  %2174 = vmatmul.msk.bf16.vlgmr.msrb.gmra.mxu2 %vm707_vm3, %v1509_v7 }
 0x87b   : > { %1769 = vmatpush.bf16.msra.mxu3 %v2274_v0 }
 0x87f   : > { %1770 = vmatpush.bf16.msra.mxu3 %v2273_v2 }
 0x883   : > { %1771 = vmatpush.bf16.msra.mxu3 %v2272_v4 }
 0x887   : > { %1772 = vmatpush.bf16.msra.mxu3 %v2271_v47 }
 0x8f7   : > { %v1576_v40 = vpop.f32.mrf.mxu1 }
 0x8f8   : > { %v1577_v10 = vadd.f32 %v1576_v40, %v1520_v6 }
 0x8fa   : > { %v1599_v11 = vmul.f32 0.044715, %v1577_v10  ;;  %v1595_v42 = vmul.f32 0.5, %v1577_v10 }
 0x8fc   : > { %v1603_v13 = vmul.f32 %v1599_v11, %v1577_v10 }
 0x8fd   : > { %v1590_v14 = vpop.f32.mrf.mxu2 }
 0x8fe   : > { %v1607_v15 = vmul.f32 %v1603_v13, %v1577_v10  ;;  %v1591_v16 = vadd.f32 %v1590_v14, %v1521_v12 }
 0x8ff   : > { %v1578_v18 = vpop.f32.mrf.mxu1 }
 0x900   : > { %v1611_v19 = vadd.f32 %v1607_v15, %v1577_v10  ;;  %v1600_v20 = vmul.f32 0.044715, %v1591_v16  ;;  %v1579_v21 = vadd.f32 %v1578_v18, %v1520_v6  ;;  %v1596_v54 = vmul.f32 0.5, %v1591_v16 }
 0x902   : > { %v1604_v22 = vmul.f32 %v1600_v20, %v1591_v16  ;;  %v1601_v59 = vmul.f32 0.044715, %v1579_v21  ;;  %v1615_v23 = vmul.f32 0.7978846, %v1611_v19  ;;  %v1597_v43 = vmul.f32 0.5, %v1579_v21 }
 0x904   : > { %v1608_v24 = vmul.f32 %v1604_v22, %v1591_v16  ;;  %v1605_v25 = vmul.f32 %v1601_v59, %v1579_v21  ;;  %2381 = vtanh.f32 %v1615_v23 }
 0x905   : > { %v1592_v26 = vpop.f32.mrf.mxu2 }
 0x906   : > { %v1612_v27 = vadd.f32 %v1608_v24, %v1591_v16  ;;  %v1609_v28 = vmul.f32 %v1605_v25, %v1579_v21  ;;  %v1593_v29 = vadd.f32 %v1592_v26, %v1521_v12 }
 0x908   : > { %v1613_v30 = vadd.f32 %v1609_v28, %v1579_v21  ;;  %v1602_v31 = vmul.f32 0.044715, %v1593_v29  ;;  %v1616_v32 = vmul.f32 0.7978846, %v1612_v27  ;;  %v1598_v7 = vmul.f32 0.5, %v1593_v29 }
 0x90a   : > { %v1617_v33 = vmul.f32 0.7978846, %v1613_v30  ;;  %v1606_v34 = vmul.f32 %v1602_v31, %v1593_v29  ;;  %v2382_v36 = vpop.eup %2381 }
 0x90b   : > { %v1623_v39 = vadd.f32 1.0, %v2382_v36 }
 0x90c   : > { %v1610_v35 = vmul.f32 %v1606_v34, %v1593_v29  ;;  %2383 = vtanh.f32 %v1617_v33 }
 0x90d   : > { %2385 = vtanh.f32 %v1616_v32  ;;  %v1627_v46 = vmul.f32 %v1623_v39, %v1595_v42 }
 0x90e   : > { %v1614_v37 = vadd.f32 %v1610_v35, %v1593_v29 }
 0x910   : > { %v1618_v38 = vmul.f32 0.7978846, %v1614_v37 }
 0x912   : > { %v2384_v41 = vpop.eup %2383  ;;  %2387 = vtanh.f32 %v1618_v38 }
 0x913   : > { %v1625_v44 = vadd.f32 1.0, %v2384_v41  ;;  %v2386_v45 = vpop.eup %2385 }
 0x914   : > { %v1624_v51 = vadd.f32 1.0, %v2386_v45 }
 0x915   : > { %v1629_v49 = vmul.f32 %v1625_v44, %v1597_v43 }
 0x916   : > { %v1628_v56 = vmul.f32 %v1624_v51, %v1596_v54 }
 0x917   : > { %v1631_v50 = vpack.c.bf16 %v1629_v49, %v1627_v46 }
 0x918   : > { %v2388_v53 = vpop.eup %2387 }
 0x919   : > { %1773 = vmatmul.bf16.vlgmr.msra.gmra.mxu3 %v1631_v50  ;;  %v1626_v55 = vadd.f32 1.0, %v2388_v53 }
 0x91b   : > { %v1630_v57 = vmul.f32 %v1626_v55, %v1598_v7 }
 0x91d   : > { %v1632_v9 = vpack.c.bf16 %v1630_v57, %v1628_v56 }
 0x91f   : > { %1787 = vmatmul.bf16.vlgmr.msrb.gmra.mxu0 %v1632_v9 }
 0x99c   : > { %v1774_v60 = vpop.f32.mrf.mxu3  ;;  %v1788_v62 = vpop.f32.mrf.mxu0 }
 0x99d   : > { %v1775_v0 = vadd.f32 %v2338_v58, %v1774_v60 }
 0x99f   : > { %v1789_v1 = vadd.f32 %v1788_v62, %v1775_v0 }
 0x9a1   : > { %v1793_v2 = vadd.f32 %v1789_v1, %v2836_v48 }
 0x9a3   : > { %1795 = vst.msk [vmem:[#allocation2] sm:$0xff] %vm707_vm3, %v1793_v2 }
 0x9a4   : > { %v1776_v3 = vpop.f32.mrf.mxu3  ;;  %v1790_v5 = vpop.f32.mrf.mxu0 }
 0x9a5   : > { %v1777_v4 = vadd.f32 %v2338_v58, %v1776_v3 }
 0x9a7   : > { %v1791_v61 = vadd.f32 %v1790_v5, %v1777_v4  ;;  %1800 = sbr.rel (%p2239_p5) target bundleno = 2756 (0xac4), region = 88 }
 0x9a9   : > { %v1794_v47 = vadd.f32 %v1791_v61, %v2841_v52 }
 0x9ab   : > { %1796 = vst.msk [vmem:[#allocation2 + $0x8] sm:$0xff] %vm707_vm3, %v1794_v47 }
 0x9ac   : > { %v1801_v6 = vld [vmem:[#allocation2] sm:$0xff] }
 0x9ad   : > { %v1805_v8 = vsel %vm707_vm3, %v1801_v6, 0.0  ;;  %v2389_v32 = vld [vmem:[%s2997_s3] ss:$0 sm:$0xff] }
 0x9ae   : > { %1806 = vadd.xlane.f32.xlu0 %v1805_v8 }
 0x9b2   : > { %v1802_v40 = vld [vmem:[#allocation2 + $0x8] sm:$0xff] }
 0x9b3   : > { %v1808_v48 = vsel %vm707_vm3, %v1802_v40, 0.0 }
 0x9b6   : > { %1809 = vadd.xlane.f32.xlu0 %v1808_v48 }
 0xa21   : > { %v1807_v10 = vpop.xlane.xlu0 %1806 }
 0xa22   : > { %v1811_v63 = vmul.f32 %v1807_v10, %v2653_v17 }
 0xa24   : > { %v1813_v11 = vsub.f32 %v1801_v6, %v1811_v63 }
 0xa26   : > { %v1815_v12 = vmul.f32 %v1813_v11, %v1813_v11 }
 0xa28   : > { %v1817_v52 = vsel %vm707_vm3, %v1815_v12, 0.0 }
 0xa29   : > { %1818 = vadd.xlane.f32.xlu1 %v1817_v52  ;;  %v1810_v13 = vpop.xlane.xlu0 %1809 }
 0xa2a   : > { %v1812_v14 = vmul.f32 %v1810_v13, %v2653_v17 }
 0xa2c   : > { %v1814_v15 = vsub.f32 %v1802_v40, %v1812_v14 }
 0xa2e   : > { %v1816_v16 = vmul.f32 %v1814_v15, %v1814_v15 }
 0xa30   : > { %v1820_v18 = vsel %vm707_vm3, %v1816_v16, 0.0 }
 0xa31   : > { %1821 = vadd.xlane.f32.xlu1 %v1820_v18 }
 0xa9c   : > { %v1819_v19 = vpop.xlane.xlu1 %1818 }
 0xa9d   : > { %v1823_v20 = vmul.f32 %v1819_v19, %v2653_v17 }
 0xa9f   : > { %v1825_v21 = vadd.f32 1e-05, %v1823_v20 }
 0xaa1   : > { %2391 = vrsqrt.f32 %v1825_v21  ;;  %vm1833_vm12 = vweird.f32 %v1825_v21 }
 0xaa4   : > { %v1822_v22 = vpop.xlane.xlu1 %1821 }
 0xaa5   : > { %v1824_v59 = vmul.f32 %v1822_v22, %v2653_v17  ;;  %v2390_v17 = vld [vmem:[%s2998_s30] ss:$0 sm:$0xff] }
 0xaa7   : > { %v2392_v23 = vpop.eup %2391  ;;  %v1826_v24 = vadd.f32 1e-05, %v1824_v59 }
 0xaa8   : > { %v1828_v25 = vmul.f32 %v2392_v23, %v1825_v21  ;;  %vm1834_vm10 = vweird.f32 %v2392_v23 }
 0xaa9   : > { %2393 = vrsqrt.f32 %v1826_v24  ;;  %vm1835_vm13 = vmor %vm1833_vm12, %vm1834_vm10  ;;  %vm1843_vm15 = vweird.f32 %v1826_v24 }
 0xaaa   : > { %v1829_v26 = vmul.f32 %v2392_v23, %v1828_v25 }
 0xaac   : > { %v1830_v27 = vmul.f32 0.5, %v1829_v26 }
 0xaae   : > { %v1831_v28 = vsub.f32 1.5, %v1830_v27 }
 0xaaf   : > { %v2394_v29 = vpop.eup %2393 }
 0xab0   : > { %v1832_v30 = vmul.f32 %v2392_v23, %v1831_v28  ;;  %v1838_v31 = vmul.f32 %v2394_v29, %v1826_v24  ;;  %vm1844_vm14 = vweird.f32 %v2394_v29 }
 0xab1   : > { %vm1845_vm0 = vmor %vm1843_vm15, %vm1844_vm14 }
 0xab2   : > { %v1836_v33 = vsel %vm1835_vm13, %v2392_v23, %v1832_v30  ;;  %v1839_v34 = vmul.f32 %v2394_v29, %v1838_v31 }
 0xab3   : > { %v1847_v35 = vmul.f32 %v1836_v33, %v1813_v11 }
 0xab4   : > { %v1840_v36 = vmul.f32 0.5, %v1839_v34 }
 0xab5   : > { %v1852_v37 = vmul.f32 %v2389_v32, %v1847_v35 }
 0xab6   : > { %v1841_v38 = vsub.f32 1.5, %v1840_v36 }
 0xab7   : > { %v1857_v39 = vadd.f32 %v2390_v17, %v1852_v37 }
 0xab8   : > { %v1842_v41 = vmul.f32 %v2394_v29, %v1841_v38 }
 0xab9   : > { %1859 = vst.msk [vmem:[#allocation6] sm:$0xff] %vm707_vm3, %v1857_v39  ;;  %v1861_v42 = vpack.c.bf16 %v1857_v39, %v1857_v39 }
 0xaba   : > { %v1846_v43 = vsel %vm1845_vm0, %v2394_v29, %v1842_v41 }
 0xabb   : > { %1863 = vst.msk [vmem:[#allocation8] sm:$0xf] %vm857_vm11, %v1861_v42  ;;  %v1848_v44 = vmul.f32 %v1846_v43, %v1814_v15 }
 0xabd   : > { %v1853_v45 = vmul.f32 %v2389_v32, %v1848_v44 }
 0xabf   : > { %v1858_v46 = vadd.f32 %v2390_v17, %v1853_v45 }
 0xac1   : > { %1860 = vst.msk [vmem:[#allocation6 + $0x8] sm:$0xff] %vm707_vm3, %v1858_v46  ;;  %v1862_v49 = vpack.c.bf16 %v1858_v46, %v1858_v46 }
 0xac3   : > { %1864 = vst.msk [vmem:[#allocation8 + $0x4] sm:$0xf] %vm857_vm11, %v1862_v49 }
 0xac4 PF: > { %p2307_p6 = scmp.eq.s32.totalorder %s2572_s22, 1  ;;  %s2476_s0 = smov [#allocation6]  }
 0xac5   : > { %s1870_s24 = sshll.u32 %s2476_s0, 4  ;;  %s2999_s15 = sld [smem:[#allocation19_spill]]  ;;  %s1871_s24 = int_to_ptr.vmem [resolvable:$true] %s1870_s24 }
 0xac6   : > { %s2477_s2 = smov 128   ;;  %s2478_s28 = smov 8  }
 0xac7   : > { %s3000_s27 = sld [smem:[#allocation20_spill]]  ;;  %s2479_s20 = smov [#allocation8]  }
 0xac8   : > { %s1884_s23 = sshll.u32 %s2479_s20, 4  ;;  %s2480_s13 = smov 4   ;;  %s1885_s23 = int_to_ptr.vmem [resolvable:$true] %s1884_s23 }
 0xacb   : > { %s1872_s16 = sshll.u32 %s2999_s15, 4  ;;  %s1873_s16 = int_to_ptr.hbm [resolvable:$true] %s1872_s16 }
 0xacc   : > { %2300 = dma.vmem_to_hbm [thread:$0]  (%p2307_p6), %s1871_s24, 256, %s1873_s16, [#allocation7], %s2477_s2, %s2477_s2, %s2478_s28  }
 0xacd   : > { %s1886_s26 = sshll.u32 %s3000_s27, 4  ;;  %s1887_s26 = int_to_ptr.hbm [resolvable:$true] %s1886_s26 }
 0xace   : > { %2302 = dma.vmem_to_hbm [thread:$0]  (%p2307_p6), %s1885_s23, 128, %s1887_s26, [#allocation9], %s2470_s4, %s2470_s4, %s2480_s13  }
 0xacf   : > { %2456 = dma.done.wait (%p2307_p6), [#allocation7], 256  }
 0xad0   : > { %2458 = vsyncadd (%p2307_p6), [#allocation7], 4294967040 }
 0xad1   : > { %2460 = dma.done.wait (%p2307_p6), [#allocation9], 128  }
 0xad2   : > { %2462 = vsyncadd (%p2307_p6), [#allocation9], 4294967168 }
 0xad3 PF: > { %s3001_s3 = sld [smem:[#allocation12_spill]] }
 0xad9   : > { %s29_s21 = sadd.s32 1, %s3001_s3  }
 0xada   : > { %p26_p7 = scmp.ge.s32.totalorder %s29_s21, 4  }
 0xadc   :  { %28 = sbr.rel (!%p26_p7) target bundleno = 11 (0xb), region = 156 }
 0xae1   :  { %1908 = vsyncpa [#allocation7], 1 }
 0xae2   :  { %1910 = vsyncpa [#allocation7 + $0x1], 1 }
 0xae3   :  { %1911 = vsyncpa [#allocation9], 1 }

</bundles_post_ra>
